<compile_context>
chip_gen: v5e
topology: v5e:2x2
jax: 0.10.0
libtpu: 0.0.40
codegen_flags: <defaults>
</compile_context>

<pallas_src>
import functools

import jax
import jax.numpy as jnp
from jax.experimental import pallas as pl
from jax.experimental.pallas import tpu as pltpu

BN_EPS = 1e-5
SUBLANE = 8


def mlp_kernel(x_ref,
               w1_ref, b1_ref,
               w2_ref, b2_ref,
               w3_ref, b3_ref,
               w4_ref, b4_ref,
               o_ref, *, precision):
    # Cast x in-kernel (free VPU op; avoids a separate wrapper-side cast pass over x).
    x = x_ref[...].astype(w1_ref.dtype)

    # Layers 1..3: Linear (eval-mode BN pre-folded into W/b) + ReLU. Dropout = identity.
    h = jnp.dot(x, w1_ref[...],
                preferred_element_type=jnp.float32, precision=precision) + b1_ref[...]
    h = jnp.maximum(h, 0.0)

    h = jnp.dot(h.astype(w2_ref.dtype), w2_ref[...],
                preferred_element_type=jnp.float32, precision=precision) + b2_ref[...]
    h = jnp.maximum(h, 0.0)

    h = jnp.dot(h.astype(w3_ref.dtype), w3_ref[...],
                preferred_element_type=jnp.float32, precision=precision) + b3_ref[...]
    h = jnp.maximum(h, 0.0)

    # Layer 4: Linear only (native d_out width; masked store on the last tile is cheap).
    out = jnp.dot(h.astype(w4_ref.dtype), w4_ref[...],
                  preferred_element_type=jnp.float32, precision=precision) + b4_ref[...]
    o_ref[...] = out.astype(o_ref.dtype)


def _round_up(n, m):
    return ((n + m - 1) // m) * m


def _fold_bn(w, b, gamma, beta, mean, var):
    """Fold eval-mode BatchNorm1d into the preceding Linear."""
    scale = gamma * jax.lax.rsqrt(var + BN_EPS)          # (1, out)
    return w * scale, (b - mean) * scale + beta


def fold_params(params, compute_dtype=jnp.bfloat16):
    """Hoisted, call-once preprocessing: fold BN and cast weights to the compute dtype.

    bf16 is the fast path on every TPU generation (the MXU is bf16-native, including
    v5e); accumulation and bias/ReLU stay f32 inside the kernel.
    """
    w1, b1 = _fold_bn(params["w1"], params["b1"],
                      params["g1"], params["be1"], params["m1"], params["v1"])
    w2, b2 = _fold_bn(params["w2"], params["b2"],
                      params["g2"], params["be2"], params["m2"], params["v2"])
    w3, b3 = _fold_bn(params["w3"], params["b3"],
                      params["g3"], params["be3"], params["m3"], params["v3"])
    w4, b4 = params["w4"], params["b4"]

    weights = tuple(w.astype(compute_dtype) for w in (w1, w2, w3, w4))
    biases = tuple(b.astype(jnp.float32) for b in (b1, b2, b3, b4))  # added to f32 acc
    return weights, biases


def run18_forward(x, weights, biases, *, batch_tile=512):
    """x: (B, input_size) f32. weights/biases: output of fold_params()."""
    B, d_in = x.shape
    d_out = weights[3].shape[1]
    compute_dtype = weights[0].dtype

    # Exact-f32 MXU passes when the compute dtype is f32; default for bf16.
    precision = jax.lax.Precision.HIGHEST if compute_dtype == jnp.float32 else None

    # Pad batch only to the sublane multiple (8); the final grid block may be ragged
    # (rows are independent, out-of-range stores are masked -- no cross-row reduction!).
    B_p = _round_up(B, SUBLANE)
    if B_p != B:
        x = jnp.pad(x, ((0, B_p - B), (0, 0)))

    bt = min(_round_up(batch_tile, SUBLANE), B_p)
    if bt == B_p and B_p >= 2 * SUBLANE:
        # Keep >=2 grid steps so v7x's 2 TensorCores both get work
        # (dimension_semantics=("parallel",) shards the batch axis across them).
        bt = _round_up(pl.cdiv(B_p, 2), SUBLANE)
    grid = (pl.cdiv(B_p, bt),)

    in_specs = [pl.BlockSpec((bt, d_in), lambda i: (i, 0))]
    args = [x]
    for w, b in zip(weights, biases):
        # Whole-array, grid-invariant blocks: constant block index => fetched once,
        # resident in VMEM across every batch tile.
        in_specs.append(pl.BlockSpec(w.shape, lambda i: (0, 0)))
        args.append(w)
        in_specs.append(pl.BlockSpec(b.shape, lambda i: (0, 0)))
        args.append(b)

    flops = 2 * B_p * (d_in * 128 + 128 * 256 + 256 * 128 + 128 * d_out)
    bytes_accessed = (x.size * x.dtype.itemsize
                      + B_p * d_out * 4
                      + sum(w.size * w.dtype.itemsize for w in weights)
                      + sum(b.size * 4 for b in biases))

    out = pl.pallas_call(
        functools.partial(mlp_kernel, precision=precision),
        out_shape=jax.ShapeDtypeStruct((B_p, d_out), jnp.float32),
        grid=grid,
        in_specs=in_specs,
        out_specs=pl.BlockSpec((bt, d_out), lambda i: (i, 0)),
        compiler_params=pltpu.CompilerParams(
            dimension_semantics=("parallel",)),
        cost_estimate=pl.CostEstimate(
            flops=flops, transcendentals=0, bytes_accessed=bytes_accessed),
    )(*args)

    return out[:B]


def init_params(key, input_size, output_size):
    """Deterministic synthetic init matching Run18Model's parameter shapes.
    Linear weights stored transposed vs PyTorch: (in, out), so y = x @ W + b."""
    dims = [(input_size, 128), (128, 256), (256, 128), (128, output_size)]
    params = {}
    keys = jax.random.split(key, 8)
    for li, (fi, fo) in enumerate(dims, start=1):
        bound = 1.0 / jnp.sqrt(fi)
        w = jax.random.uniform(keys[2 * (li - 1)], (fi, fo), jnp.float32, -bound, bound)
        b = jax.random.uniform(keys[2 * (li - 1) + 1], (1, fo), jnp.float32, -bound, bound)
        params[f"w{li}"] = w
        params[f"b{li}"] = b
    # BatchNorm1d params for layers 1..3 (gamma=1, beta=0, running mean=0, var=1)
    for li, width in [(1, 128), (2, 256), (3, 128)]:
        params[f"g{li}"] = jnp.ones((1, width), jnp.float32)
        params[f"be{li}"] = jnp.zeros((1, width), jnp.float32)
        params[f"m{li}"] = jnp.zeros((1, width), jnp.float32)
        params[f"v{li}"] = jnp.ones((1, width), jnp.float32)
    return params


def _bn_relu(h, gamma, beta, mean, var):
    h = gamma * (h - mean) * jax.lax.rsqrt(var + BN_EPS) + beta
    return jnp.maximum(h, 0.0)


def reference_forward(x, params):
    """Pure-JAX reference with the original (unfolded) eval-mode BN formulation."""
    h = x @ params["w1"] + params["b1"]
    h = _bn_relu(h, params["g1"], params["be1"], params["m1"], params["v1"])
    h = h @ params["w2"] + params["b2"]
    h = _bn_relu(h, params["g2"], params["be2"], params["m2"], params["v2"])
    h = h @ params["w3"] + params["b3"]
    h = _bn_relu(h, params["g3"], params["be3"], params["m3"], params["v3"])
    return h @ params["w4"] + params["b4"]


if __name__ == "__main__":
    key = jax.random.PRNGKey(0)
    k_x, k_p = jax.random.split(key)

    batch, input_size, output_size = 8, 32, 16
    x = jax.random.normal(k_x, (batch, input_size), jnp.float32)
    params = init_params(k_p, input_size, output_size)

    ref = reference_forward(x, params)

    # f32 compute path (Precision.HIGHEST: exact-f32 MXU passes). BN folding only
    # reassociates floats, so this matches the unfolded reference tightly.
    w_f32, b_f32 = fold_params(params, compute_dtype=jnp.float32)
    out = jax.block_until_ready(run18_forward(x, w_f32, b_f32, batch_tile=512))
    assert out.shape == (batch, output_size)
    assert jnp.allclose(out, ref, atol=1e-4, rtol=1e-4), "f32 mismatch vs JAX reference"

    # bf16 matmul path (recommended default on v5e/v6e/v7x); f32 accumulation.
    w_bf16, b_bf16 = fold_params(params, compute_dtype=jnp.bfloat16)
    out_bf16 = jax.block_until_ready(run18_forward(x, w_bf16, b_bf16, batch_tile=512))
    assert out_bf16.shape == (batch, output_size)
    assert jnp.allclose(out_bf16, ref, atol=1e-1, rtol=1e-1), "bf16 mismatch vs JAX reference"

    print("KERNEL_OK")
</pallas_src>

<mosaic_0001>
module attributes {stable_mosaic.version = 11 : i64} {
  func.func @mlp_kernel(%arg0: i32, %arg1: memref<8x32xf32, #tpu.memory_space<vmem>>, %arg2: memref<32x128xf32, #tpu.memory_space<vmem>>, %arg3: memref<1x128xf32, #tpu.memory_space<vmem>>, %arg4: memref<128x256xf32, #tpu.memory_space<vmem>>, %arg5: memref<1x256xf32, #tpu.memory_space<vmem>>, %arg6: memref<256x128xf32, #tpu.memory_space<vmem>>, %arg7: memref<1x128xf32, #tpu.memory_space<vmem>>, %arg8: memref<128x16xf32, #tpu.memory_space<vmem>>, %arg9: memref<1x16xf32, #tpu.memory_space<vmem>>, %arg10: memref<8x16xf32, #tpu.memory_space<vmem>>) attributes {dimension_semantics = [#tpu.dimension_semantics<parallel>], iteration_bounds = array<i64: 1>, scalar_prefetch = 0 : i64, scratch_operands = 0 : i64, tpu.core_type = #tpu.core_type<tc>, window_params = [{transform_indices = @transform_0, window_bounds = array<i64: 8, 32>}, {pipeline_mode = #tpu.pipeline_mode<synchronous>, transform_indices = @transform_1, window_bounds = array<i64: 32, 128>}, {pipeline_mode = #tpu.pipeline_mode<synchronous>, transform_indices = @transform_2, window_bounds = array<i64: 1, 128>}, {pipeline_mode = #tpu.pipeline_mode<synchronous>, transform_indices = @transform_3, window_bounds = array<i64: 128, 256>}, {pipeline_mode = #tpu.pipeline_mode<synchronous>, transform_indices = @transform_4, window_bounds = array<i64: 1, 256>}, {pipeline_mode = #tpu.pipeline_mode<synchronous>, transform_indices = @transform_5, window_bounds = array<i64: 256, 128>}, {pipeline_mode = #tpu.pipeline_mode<synchronous>, transform_indices = @transform_6, window_bounds = array<i64: 1, 128>}, {pipeline_mode = #tpu.pipeline_mode<synchronous>, transform_indices = @transform_7, window_bounds = array<i64: 128, 16>}, {pipeline_mode = #tpu.pipeline_mode<synchronous>, transform_indices = @transform_8, window_bounds = array<i64: 1, 16>}, {transform_indices = @transform_9, window_bounds = array<i64: 8, 16>}]} {
    %c0 = arith.constant 0 : index
    %c0_0 = arith.constant 0 : index
    %0 = vector.load %arg1[%c0, %c0_0] : memref<8x32xf32, #tpu.memory_space<vmem>>, vector<8x32xf32>
    %c0_1 = arith.constant 0 : index
    %c0_2 = arith.constant 0 : index
    %1 = vector.load %arg2[%c0_1, %c0_2] : memref<32x128xf32, #tpu.memory_space<vmem>>, vector<32x128xf32>
    %cst = arith.constant dense<0.000000e+00> : vector<8x128xf32>
    %2 = tpu.matmul %0, %1, %cst {dimension_numbers = #tpu.dot_dimension_numbers<[1], [0], [0], [1], [0, 0, 1, 1], [], []>, precision = #tpu.contract_precision<fp32>} : vector<8x32xf32>, vector<32x128xf32>, vector<8x128xf32> -> vector<8x128xf32>
    %c0_3 = arith.constant 0 : index
    %c0_4 = arith.constant 0 : index
    %3 = vector.load %arg3[%c0_3, %c0_4] : memref<1x128xf32, #tpu.memory_space<vmem>>, vector<1x128xf32>
    %4 = vector.broadcast %3 : vector<1x128xf32> to vector<8x128xf32>
    %5 = arith.addf %2, %4 : vector<8x128xf32>
    %cst_5 = arith.constant 0.000000e+00 : f32
    %6 = vector.broadcast %cst_5 : f32 to vector<8x128xf32>
    %7 = arith.maximumf %5, %6 : vector<8x128xf32>
    %c0_6 = arith.constant 0 : index
    %c0_7 = arith.constant 0 : index
    %8 = vector.load %arg4[%c0_6, %c0_7] : memref<128x256xf32, #tpu.memory_space<vmem>>, vector<128x256xf32>
    %cst_8 = arith.constant dense<0.000000e+00> : vector<8x256xf32>
    %9 = tpu.matmul %7, %8, %cst_8 {dimension_numbers = #tpu.dot_dimension_numbers<[1], [0], [0], [1], [0, 0, 1, 1], [], []>, precision = #tpu.contract_precision<fp32>} : vector<8x128xf32>, vector<128x256xf32>, vector<8x256xf32> -> vector<8x256xf32>
    %c0_9 = arith.constant 0 : index
    %c0_10 = arith.constant 0 : index
    %10 = vector.load %arg5[%c0_9, %c0_10] : memref<1x256xf32, #tpu.memory_space<vmem>>, vector<1x256xf32>
    %11 = vector.broadcast %10 : vector<1x256xf32> to vector<8x256xf32>
    %12 = arith.addf %9, %11 : vector<8x256xf32>
    %cst_11 = arith.constant 0.000000e+00 : f32
    %13 = vector.broadcast %cst_11 : f32 to vector<8x256xf32>
    %14 = arith.maximumf %12, %13 : vector<8x256xf32>
    %c0_12 = arith.constant 0 : index
    %c0_13 = arith.constant 0 : index
    %15 = vector.load %arg6[%c0_12, %c0_13] : memref<256x128xf32, #tpu.memory_space<vmem>>, vector<256x128xf32>
    %cst_14 = arith.constant dense<0.000000e+00> : vector<8x128xf32>
    %16 = tpu.matmul %14, %15, %cst_14 {dimension_numbers = #tpu.dot_dimension_numbers<[1], [0], [0], [1], [0, 0, 1, 1], [], []>, precision = #tpu.contract_precision<fp32>} : vector<8x256xf32>, vector<256x128xf32>, vector<8x128xf32> -> vector<8x128xf32>
    %c0_15 = arith.constant 0 : index
    %c0_16 = arith.constant 0 : index
    %17 = vector.load %arg7[%c0_15, %c0_16] : memref<1x128xf32, #tpu.memory_space<vmem>>, vector<1x128xf32>
    %18 = vector.broadcast %17 : vector<1x128xf32> to vector<8x128xf32>
    %19 = arith.addf %16, %18 : vector<8x128xf32>
    %cst_17 = arith.constant 0.000000e+00 : f32
    %20 = vector.broadcast %cst_17 : f32 to vector<8x128xf32>
    %21 = arith.maximumf %19, %20 : vector<8x128xf32>
    %c0_18 = arith.constant 0 : index
    %c0_19 = arith.constant 0 : index
    %22 = vector.load %arg8[%c0_18, %c0_19] : memref<128x16xf32, #tpu.memory_space<vmem>>, vector<128x16xf32>
    %cst_20 = arith.constant dense<0.000000e+00> : vector<8x16xf32>
    %23 = tpu.matmul %21, %22, %cst_20 {dimension_numbers = #tpu.dot_dimension_numbers<[1], [0], [0], [1], [0, 0, 1, 1], [], []>, precision = #tpu.contract_precision<fp32>} : vector<8x128xf32>, vector<128x16xf32>, vector<8x16xf32> -> vector<8x16xf32>
    %c0_21 = arith.constant 0 : index
    %c0_22 = arith.constant 0 : index
    %24 = vector.load %arg9[%c0_21, %c0_22] : memref<1x16xf32, #tpu.memory_space<vmem>>, vector<1x16xf32>
    %25 = vector.broadcast %24 : vector<1x16xf32> to vector<8x16xf32>
    %26 = arith.addf %23, %25 : vector<8x16xf32>
    %c0_23 = arith.constant 0 : index
    %c0_24 = arith.constant 0 : index
    %27 = vector.load %arg10[%c0_23, %c0_24] : memref<8x16xf32, #tpu.memory_space<vmem>>, vector<8x16xf32>
    tpu.vector_store %arg10[%c0_23, %c0_24], %26 {strides = array<i32>} : memref<8x16xf32, #tpu.memory_space<vmem>>, vector<8x16xf32>,
    return
  }
  func.func @transform_0(%arg0: i32) -> (i32, i32) {
    %c0_i32 = arith.constant 0 : i32
    %c0_i32_0 = arith.constant 0 : i32
    return %arg0, %c0_i32 : i32, i32
  }
  func.func @transform_1(%arg0: i32) -> (i32, i32) {
    %c0_i32 = arith.constant 0 : i32
    %c0_i32_0 = arith.constant 0 : i32
    %c0_i32_1 = arith.constant 0 : i32
    return %c0_i32, %c0_i32_0 : i32, i32
  }
  func.func @transform_2(%arg0: i32) -> (i32, i32) {
    %c0_i32 = arith.constant 0 : i32
    %c0_i32_0 = arith.constant 0 : i32
    %c0_i32_1 = arith.constant 0 : i32
    return %c0_i32, %c0_i32_0 : i32, i32
  }
  func.func @transform_3(%arg0: i32) -> (i32, i32) {
    %c0_i32 = arith.constant 0 : i32
    %c0_i32_0 = arith.constant 0 : i32
    %c0_i32_1 = arith.constant 0 : i32
    return %c0_i32, %c0_i32_0 : i32, i32
  }
  func.func @transform_4(%arg0: i32) -> (i32, i32) {
    %c0_i32 = arith.constant 0 : i32
    %c0_i32_0 = arith.constant 0 : i32
    %c0_i32_1 = arith.constant 0 : i32
    return %c0_i32, %c0_i32_0 : i32, i32
  }
  func.func @transform_5(%arg0: i32) -> (i32, i32) {
    %c0_i32 = arith.constant 0 : i32
    %c0_i32_0 = arith.constant 0 : i32
    %c0_i32_1 = arith.constant 0 : i32
    return %c0_i32, %c0_i32_0 : i32, i32
  }
  func.func @transform_6(%arg0: i32) -> (i32, i32) {
    %c0_i32 = arith.constant 0 : i32
    %c0_i32_0 = arith.constant 0 : i32
    %c0_i32_1 = arith.constant 0 : i32
    return %c0_i32, %c0_i32_0 : i32, i32
  }
  func.func @transform_7(%arg0: i32) -> (i32, i32) {
    %c0_i32 = arith.constant 0 : i32
    %c0_i32_0 = arith.constant 0 : i32
    %c0_i32_1 = arith.constant 0 : i32
    return %c0_i32, %c0_i32_0 : i32, i32
  }
  func.func @transform_8(%arg0: i32) -> (i32, i32) {
    %c0_i32 = arith.constant 0 : i32
    %c0_i32_0 = arith.constant 0 : i32
    %c0_i32_1 = arith.constant 0 : i32
    return %c0_i32, %c0_i32_0 : i32, i32
  }
  func.func @transform_9(%arg0: i32) -> (i32, i32) {
    %c0_i32 = arith.constant 0 : i32
    %c0_i32_0 = arith.constant 0 : i32
    return %arg0, %c0_i32 : i32, i32
  }
}

</mosaic_0001>

<bundles_post_ra>
// kernel: tpu_custom_call.1
= control target key start
LH: loop header
LB: loop body
LE: loop exit
PB: predicated region body
PF: predicated region fallthrough
CT: control target
= control target key end

     0   :  { %14 = vsyncpa [#allocation3], 0  ;;  %s3584_s0 = inlined_call_operand.vmem [shape: f32[8,32], index: 0, kind: input, shape index: {}]   ;;  %s3585_s1 = inlined_call_operand.vmem [shape: f32[32,128], index: 1, kind: input, shape index: {}]   ;;  %s3586_s2 = inlined_call_operand.vmem [shape: f32[1,128], index: 2, kind: input, shape index: {}]   ;;  %s3587_s3 = inlined_call_operand.hbm [shape: f32[128,256], index: 3, kind: input, shape index: {}]   ;;  %s3588_s4 = inlined_call_operand.vmem [shape: f32[1,256], index: 4, kind: input, shape index: {}]   ;;  %s3589_s5 = inlined_call_operand.hbm [shape: f32[256,128], index: 5, kind: input, shape index: {}]   ;;  %s3590_s6 = inlined_call_operand.vmem [shape: f32[1,128], index: 6, kind: input, shape index: {}]   ;;  %s3591_s7 = inlined_call_operand.vmem [shape: f32[128,16], index: 7, kind: input, shape index: {}]   ;;  %s3592_s8 = inlined_call_operand.vmem [shape: f32[1,16], index: 8, kind: input, shape index: {}]   ;;  %s3593_s9 = inlined_call_operand.hbm [shape: f32[8,16], index: 9, kind: output, shape index: {}]  }
   0x1   :  { %15 = vsyncpa [#allocation6], 0 }
   0x2   :  { %16 = vsyncpa [#allocation4], 0  ;;  %s27_s11 = sshll.u32 %s3587_s3, 4  ;;  %s2174_s12 = smov [#allocation2]   ;;  %s28_s11 = int_to_ptr.hbm [resolvable:$true] %s27_s11 }
   0x3   :  { %s29_s13 = sshll.u32 %s2174_s12, 4  ;;  %s42_s16 = sshll.u32 %s3589_s5, 4  ;;  %s30_s13 = int_to_ptr.vmem [resolvable:$true] %s29_s13  ;;  %s43_s16 = int_to_ptr.hbm [resolvable:$true] %s42_s16 }
   0x4   :  { %s2175_s17 = smov 256   ;;  %s2176_s18 = smov 16  }
   0x5   :  { %35 = dma.hbm_to_vmem [thread:$0]  %s28_s11, 4096, %s30_s13, [#allocation3], %s2175_s17, %s2175_s17, %s2176_s18  }
   0x6   :  { %s2177_s19 = smov [#allocation5]   ;;  %s2178_s21 = smov 128  }
   0x7   :  { %s44_s20 = sshll.u32 %s2177_s19, 4  ;;  %s2179_s22 = smov 8   ;;  %s45_s20 = int_to_ptr.vmem [resolvable:$true] %s44_s20 }
   0x8   :  { %50 = dma.hbm_to_vmem [thread:$0]  %s43_s16, 4096, %s45_s20, [#allocation6], %s2178_s21, %s2178_s21, %s2179_s22  }
   0x9   :  { %2168 = dma.done.wait [#allocation3], 4096  }
   0xa   :  { %2169 = vsyncadd [#allocation3], 4294963200 }
   0xb   :  { %2170 = dma.done.wait [#allocation6], 4096  }
   0xc   :  { %2171 = vsyncadd [#allocation6], 4294963200  ;;  %vm74_vm0 = vcmask 261120   ;;  %v69_v0 = vld [vmem:[%s3585_s1 + $0x18] sm:$0xff]  ;;  %v68_v1 = vld [vmem:[%s3585_s1 + $0x10] sm:$0xff]  ;;  %s2180_s17 = smov [#allocation7]  }
   0xd   :  { %v67_v2 = vld [vmem:[%s3585_s1 + $0x8] sm:$0xff]  ;;  %v2246_v3 = vand.u32 4294901760, %v69_v0  ;;  %v2248_v4 = vand.u32 4294901760, %v68_v1  ;;  %v66_v6 = vld [vmem:[%s3585_s1] sm:$0xff]  ;;  %v294_v10 = vld [vmem:[#allocation2 + $0xf0] sm:$0xff]  ;;  %s2073_s18 = sshll.u32 %s2180_s17, 4  ;;  %s2074_s18 = int_to_ptr.vmem [resolvable:$true] %s2073_s18 }
   0xe   :  { %v2250_v5 = vand.u32 4294901760, %v67_v2  ;;  %v65_v7 = vld [vmem:[%s3584_s0] sm:$0xff]  ;;  %v2258_v8 = vand.u32 4294901760, %v66_v6  ;;  %v290_v12 = vld [vmem:[#allocation2 + $0xd0] sm:$0xff]  ;;  %v2275_v18 = vand.u32 4294901760, %v294_v10  ;;  %s2075_s21 = sshll.u32 %s3593_s9, 4  ;;  %s2076_s21 = int_to_ptr.hbm [resolvable:$true] %s2075_s21 }
   0xf   :  { %v76_v9 = vsel %vm74_vm0, %v65_v7, 0  ;;  %v292_v11 = vld [vmem:[#allocation2 + $0xe0] sm:$0xff]  ;;  %91 = vmatpush.msra.mxu0 %v2246_v3  ;;  %v2262_v13 = vsub.f32 %v69_v0, %v2246_v3  ;;  %v2267_v15 = vsub.f32 %v68_v1, %v2248_v4  ;;  %v2279_v20 = vand.u32 4294901760, %v290_v12  ;;  %v286_v38 = vld [vmem:[#allocation2 + $0xb0] sm:$0xff] }
  0x10   :  { %v2264_v14 = vand.u32 4294901760, %v76_v9  ;;  %v2270_v16 = vsub.f32 %v67_v2, %v2250_v5  ;;  %v2273_v17 = vsub.f32 %v66_v6, %v2258_v8  ;;  %v2277_v19 = vand.u32 4294901760, %v292_v11  ;;  %303 = vmatpush.msra.mxu2 %v2275_v18  ;;  %v288_v37 = vld [vmem:[#allocation2 + $0xc0] sm:$0xff]  ;;  %v282_v43 = vld [vmem:[#allocation2 + $0x90] sm:$0xff] }
  0x11   :  { %93 = vmatpush.msra.mxu0 %v2248_v4  ;;  %v121_v21 = vand.u32 4294901760, %v2262_v13  ;;  %v127_v23 = vand.u32 4294901760, %v2267_v15  ;;  %v2290_v26 = vsub.f32 %v294_v10, %v2275_v18  ;;  %v2296_v28 = vsub.f32 %v290_v12, %v2279_v20  ;;  %v284_v39 = vld [vmem:[#allocation2 + $0xa0] sm:$0xff]  ;;  %v278_v61 = vld [vmem:[#allocation2 + $0x70] sm:$0xff] }
  0x12   :  { %v2284_v22 = vsub.f32 %v76_v9, %v2264_v14  ;;  %v133_v24 = vand.u32 4294901760, %v2270_v16  ;;  %v139_v25 = vand.u32 4294901760, %v2273_v17  ;;  %v2293_v27 = vsub.f32 %v292_v11, %v2277_v19  ;;  %305 = vmatpush.msra.mxu2 %v2277_v19  ;;  %v280_v52 = vld [vmem:[#allocation2 + $0x80] sm:$0xff] }
  0x13   :  { %95 = vmatpush.msra.mxu0 %v2250_v5  ;;  %v122_v29 = vsub.f32 %v2262_v13, %v121_v21  ;;  %v128_v31 = vsub.f32 %v2267_v15, %v127_v23  ;;  %v345_v34 = vand.u32 4294901760, %v2290_v26  ;;  %v357_v36 = vand.u32 4294901760, %v2296_v28  ;;  %v276_v9 = vld [vmem:[#allocation2 + $0x60] sm:$0xff] }
  0x14   :  { %v100_v30 = vand.u32 4294901760, %v2284_v22  ;;  %v134_v32 = vsub.f32 %v2270_v16, %v133_v24  ;;  %v140_v33 = vsub.f32 %v2273_v17, %v139_v25  ;;  %v351_v35 = vand.u32 4294901760, %v2293_v27  ;;  %307 = vmatpush.msra.mxu2 %v2279_v20 }
  0x15   :  { %97 = vmatpush.msra.mxu0 %v2258_v8  ;;  %v123_v40 = vand.u32 4294901760, %v122_v29  ;;  %v129_v42 = vand.u32 4294901760, %v128_v31  ;;  %v346_v45 = vsub.f32 %v2290_v26, %v345_v34  ;;  %v358_v47 = vsub.f32 %v2296_v28, %v357_v36 }
  0x16   :  { %v101_v41 = vsub.f32 %v2284_v22, %v100_v30  ;;  %v135_v44 = vand.u32 4294901760, %v134_v32  ;;  %v352_v46 = vsub.f32 %v2293_v27, %v351_v35  ;;  %v2332_v49 = vand.u32 4294901760, %v288_v37  ;;  %v274_v32 = vld [vmem:[#allocation2 + $0x50] sm:$0xff] }
  0x17   :  { %162 = vmatpush.msrb.mxu0 %v2262_v13  ;;  %124 = vmatpush.msra.mxu1 %v123_v40  ;;  %v2334_v50 = vand.u32 4294901760, %v286_v38  ;;  %v2336_v51 = vand.u32 4294901760, %v284_v39  ;;  %v141_v53 = vand.u32 4294901760, %v140_v33  ;;  %v347_v54 = vand.u32 4294901760, %v346_v45 }
  0x18   :  { %v102_v48 = vand.u32 4294901760, %v101_v41  ;;  %v353_v55 = vand.u32 4294901760, %v352_v46  ;;  %v2339_v56 = vand.u32 4294901760, %v282_v43  ;;  %v2342_v57 = vsub.f32 %v288_v37, %v2332_v49  ;;  %309 = vmatpush.msra.mxu2 %v2332_v49 }
  0x19   :  { %165 = vmatpush.msrb.mxu0 %v2267_v15  ;;  %130 = vmatpush.msra.mxu1 %v129_v42  ;;  %v2345_v58 = vsub.f32 %v286_v38, %v2334_v50  ;;  %v2348_v59 = vsub.f32 %v284_v39, %v2336_v51  ;;  %v2350_v60 = vand.u32 4294901760, %v280_v52  ;;  %v359_v62 = vand.u32 4294901760, %v358_v47  ;;  %v272_v39 = vld [vmem:[#allocation2 + $0x40] sm:$0xff] }
  0x1a   :  { %103 = vmatmul.f32.vlgmr.msra.gmra.mxu0 %v102_v48  ;;  %348 = vmatpush.msra.mxu3 %v347_v54  ;;  %v2354_v63 = vsub.f32 %v282_v43, %v2339_v56  ;;  %v2356_v0 = vand.u32 4294901760, %v278_v61  ;;  %v363_v1 = vand.u32 4294901760, %v2342_v57  ;;  %v2370_v12 = vand.u32 4294901760, %v276_v9  ;;  %v270_v43 = vld [vmem:[#allocation2 + $0x30] sm:$0xff] }
  0x1b   :  { %168 = vmatpush.msrb.mxu0 %v2270_v16  ;;  %136 = vmatpush.msra.mxu1 %v135_v44  ;;  %v369_v2 = vand.u32 4294901760, %v2345_v58  ;;  %v375_v6 = vand.u32 4294901760, %v2348_v59  ;;  %v2363_v7 = vsub.f32 %v280_v52, %v2350_v60  ;;  %v2385_v13 = vand.u32 4294901760, %v274_v32  ;;  %v268_v52 = vld [vmem:[#allocation2 + $0x20] sm:$0xff] }
  0x1c   :  { %354 = vmatpush.msra.mxu3 %v353_v55  ;;  %v381_v10 = vand.u32 4294901760, %v2354_v63  ;;  %v2368_v11 = vsub.f32 %v278_v61, %v2356_v0  ;;  %v364_v29 = vsub.f32 %v2342_v57, %v363_v1  ;;  %v2391_v38 = vsub.f32 %v276_v9, %v2370_v12  ;;  %311 = vmatpush.msra.mxu2 %v2334_v50  ;;  %v266_v61 = vld [vmem:[#allocation2 + $0x10] sm:$0xff] }
  0x1d   :  { %171 = vmatpush.msrb.mxu0 %v2273_v17  ;;  %142 = vmatpush.msra.mxu1 %v141_v53  ;;  %v370_v31 = vsub.f32 %v2345_v58, %v369_v2  ;;  %v376_v33 = vsub.f32 %v2348_v59, %v375_v6  ;;  %v387_v37 = vand.u32 4294901760, %v2363_v7  ;;  %v2401_v15 = vsub.f32 %v274_v32, %v2385_v13 }
  0x1e   :  { %144 = vmatmul.f32.vlgmr.msra.gmra.mxu1 %v2264_v14  ;;  %360 = vmatpush.msra.mxu3 %v359_v62  ;;  %v382_v41 = vsub.f32 %v2354_v63, %v381_v10  ;;  %v393_v42 = vand.u32 4294901760, %v2368_v11  ;;  %v2410_v46 = vand.u32 4294901760, %v270_v43  ;;  %v399_v47 = vand.u32 4294901760, %v2391_v38 }
  0x1f   :  { %220 = vmatpush.msra.mxu0 %v121_v21  ;;  %191 = vmatpush.msrb.mxu1 %v2246_v3  ;;  %v365_v21 = vand.u32 4294901760, %v364_v29  ;;  %v371_v40 = vand.u32 4294901760, %v370_v31  ;;  %v377_v44 = vand.u32 4294901760, %v376_v33  ;;  %v388_v45 = vsub.f32 %v2363_v7, %v387_v37  ;;  %v264_v31 = vld [vmem:[#allocation2] sm:$0xff] }
  0x20   :  { %313 = vmatpush.msra.mxu2 %v2336_v51  ;;  %v383_v16 = vand.u32 4294901760, %v382_v41  ;;  %v2423_v53 = vand.u32 4294901760, %v268_v52  ;;  %v405_v54 = vand.u32 4294901760, %v2401_v15  ;;  %v2429_v55 = vsub.f32 %v270_v43, %v2410_v46 }
  0x21   :  { %224 = vmatpush.msra.mxu0 %v127_v23  ;;  %193 = vmatpush.msrb.mxu1 %v2248_v4  ;;  %v2403_v23 = vand.u32 4294901760, %v272_v39  ;;  %v389_v17 = vand.u32 4294901760, %v388_v45  ;;  %v400_v62 = vsub.f32 %v2391_v38, %v399_v47  ;;  %vm2066_vm1 = vcmask 130048  }
  0x22   :  { %174 = vmatmul.f32.vlgmr.msrb.gmra.mxu0 %v2284_v22  ;;  %366 = vmatpush.msra.mxu3 %v365_v21  ;;  %v2442_v29 = vsub.f32 %v268_v52, %v2423_v53  ;;  %v417_v32 = vand.u32 4294901760, %v2429_v55 }
  0x23   :  { %228 = vmatpush.msra.mxu0 %v133_v24  ;;  %195 = vmatpush.msrb.mxu1 %v2250_v5  ;;  %v2416_v48 = vsub.f32 %v272_v39, %v2403_v23  ;;  %v394_v24 = vsub.f32 %v2368_v11, %v393_v42  ;;  %v401_v21 = vand.u32 4294901760, %v400_v62 }
  0x24   :  { %372 = vmatpush.msra.mxu3 %v371_v40  ;;  %315 = vmatpush.msra.mxu2 %v2339_v56  ;;  %v423_v39 = vand.u32 4294901760, %v2442_v29 }
  0x25   :  { %232 = vmatpush.msra.mxu0 %v139_v25  ;;  %197 = vmatpush.msrb.mxu1 %v2258_v8  ;;  %v2433_v25 = vand.u32 4294901760, %v266_v61  ;;  %v411_v9 = vand.u32 4294901760, %v2416_v48  ;;  %v395_v22 = vand.u32 4294901760, %v394_v24 }
  0x26   :  { %201 = vmatmul.f32.vlgmr.msrb.gmra.mxu1 %v100_v30  ;;  %378 = vmatpush.msra.mxu3 %v377_v44  ;;  %v2445_v30 = vand.u32 4294901760, %v264_v31 }
  0x27   :  { %446 = vmatpush.msrb.mxu0 %v2290_v26  ;;  %251 = vmatpush.msra.mxu1 %v2246_v3  ;;  %v406_v3 = vsub.f32 %v2401_v15, %v405_v54  ;;  %v2454_v33 = vsub.f32 %v266_v61, %v2433_v25 }
  0x28   :  { %384 = vmatpush.msra.mxu3 %v383_v16  ;;  %317 = vmatpush.msra.mxu2 %v2350_v60  ;;  %v2464_v40 = vsub.f32 %v264_v31, %v2445_v30 }
  0x29   :  { %449 = vmatpush.msrb.mxu0 %v2293_v27  ;;  %253 = vmatpush.msra.mxu1 %v2248_v4  ;;  %v412_v4 = vsub.f32 %v2416_v48, %v411_v9  ;;  %v407_v41 = vand.u32 4294901760, %v406_v3  ;;  %v429_v43 = vand.u32 4294901760, %v2454_v33 }
  0x2a   :  { %234 = vmatmul.f32.vlgmr.msra.gmra.mxu0 %v2264_v14  ;;  %390 = vmatpush.msra.mxu3 %v389_v17  ;;  %v435_v45 = vand.u32 4294901760, %v2464_v40 }
  0x2b   :  { %452 = vmatpush.msrb.mxu0 %v2296_v28  ;;  %255 = vmatpush.msra.mxu1 %v2250_v5  ;;  %v418_v5 = vsub.f32 %v2429_v55, %v417_v32  ;;  %v413_v44 = vand.u32 4294901760, %v412_v4  ;;  %v430_v52 = vsub.f32 %v2454_v33, %v429_v43  ;;  %v291_v28 = vld [vmem:[#allocation2 + $0xd8] sm:$0xff] }
  0x2c   :  { %396 = vmatpush.msra.mxu3 %v395_v22  ;;  %319 = vmatpush.msra.mxu2 %v2356_v0  ;;  %v436_v24 = vsub.f32 %v2464_v40, %v435_v45 }
  0x2d   :  { %455 = vmatpush.msrb.mxu0 %v2342_v57  ;;  %257 = vmatpush.msra.mxu1 %v2258_v8  ;;  %v424_v8 = vsub.f32 %v2442_v29, %v423_v39  ;;  %v431_v61 = vand.u32 4294901760, %v430_v52 }
  0x2e   :  { %259 = vmatmul.f32.vlgmr.msra.gmra.mxu1 %v2264_v14  ;;  %402 = vmatpush.msra.mxu3 %v401_v21  ;;  %v419_v14 = vand.u32 4294901760, %v418_v5  ;;  %v437_v17 = vand.u32 4294901760, %v436_v24 }
  0x2f   :  { %458 = vmatpush.msrb.mxu0 %v2345_v58  ;;  %499 = vmatpush.msrb.mxu1 %v2275_v18  ;;  %v425_v16 = vand.u32 4294901760, %v424_v8  ;;  %v287_v58 = vld [vmem:[#allocation2 + $0xb8] sm:$0xff]  ;;  %v273_v8 = vld [vmem:[#allocation2 + $0x48] sm:$0xff] }
  0x30   :  { %321 = vmatpush.msra.mxu2 %v2370_v12  ;;  %408 = vmatpush.msra.mxu3 %v407_v41  ;;  %v2667_v52 = vand.u32 4294901760, %v273_v8 }
  0x31   :  { %461 = vmatpush.msrb.mxu0 %v2348_v59  ;;  %501 = vmatpush.msrb.mxu1 %v2277_v19 }
  0x32   :  { %323 = vmatpush.msra.mxu2 %v2385_v13  ;;  %414 = vmatpush.msra.mxu3 %v413_v44 }
  0x33   :  { %464 = vmatpush.msrb.mxu0 %v2354_v63  ;;  %503 = vmatpush.msrb.mxu1 %v2279_v20 }
  0x34   :  { %325 = vmatpush.msra.mxu2 %v2403_v23  ;;  %420 = vmatpush.msra.mxu3 %v419_v14 }
  0x35   :  { %467 = vmatpush.msrb.mxu0 %v2363_v7  ;;  %505 = vmatpush.msrb.mxu1 %v2332_v49 }
  0x36   :  { %327 = vmatpush.msra.mxu2 %v2410_v46  ;;  %426 = vmatpush.msra.mxu3 %v425_v16 }
  0x37   :  { %470 = vmatpush.msrb.mxu0 %v2368_v11  ;;  %507 = vmatpush.msrb.mxu1 %v2334_v50 }
  0x38   :  { %329 = vmatpush.msra.mxu2 %v2423_v53  ;;  %432 = vmatpush.msra.mxu3 %v431_v61  ;;  %v271_v61 = vld [vmem:[#allocation2 + $0x38] sm:$0xff] }
  0x39   :  { %473 = vmatpush.msrb.mxu0 %v2391_v38  ;;  %509 = vmatpush.msrb.mxu1 %v2336_v51 }
  0x3a   :  { %331 = vmatpush.msra.mxu2 %v2433_v25  ;;  %438 = vmatpush.msra.mxu3 %v437_v17 }
  0x3b   :  { %476 = vmatpush.msrb.mxu0 %v2401_v15  ;;  %511 = vmatpush.msrb.mxu1 %v2339_v56 }
  0x3c   :  { %607 = vmatpush.msrb.mxu3 %v2275_v18  ;;  %333 = vmatpush.msra.mxu2 %v2445_v30  ;;  %v295_v18 = vld [vmem:[#allocation2 + $0xf8] sm:$0xff] }
  0x3d   :  { %479 = vmatpush.msrb.mxu0 %v2416_v48  ;;  %513 = vmatpush.msrb.mxu1 %v2350_v60 }
  0x3e   :  { %609 = vmatpush.msrb.mxu3 %v2277_v19  ;;  %540 = vmatpush.msrb.mxu2 %v345_v34  ;;  %v2567_v19 = vand.u32 4294901760, %v295_v18 }
  0x3f   :  { %482 = vmatpush.msrb.mxu0 %v2429_v55  ;;  %515 = vmatpush.msrb.mxu1 %v2356_v0 }
  0x40   :  { %611 = vmatpush.msrb.mxu3 %v2279_v20  ;;  %544 = vmatpush.msrb.mxu2 %v351_v35  ;;  %v293_v20 = vld [vmem:[#allocation2 + $0xe8] sm:$0xff]  ;;  %v2571_v26 = vsub.f32 %v295_v18, %v2567_v19  ;;  %v2577_v35 = vand.u32 4294901760, %v291_v28 }
  0x41   :  { %485 = vmatpush.msrb.mxu0 %v2442_v29  ;;  %517 = vmatpush.msrb.mxu1 %v2370_v12  ;;  %v2573_v27 = vand.u32 4294901760, %v293_v20 }
  0x42   :  { %613 = vmatpush.msrb.mxu3 %v2332_v49  ;;  %548 = vmatpush.msrb.mxu2 %v357_v36  ;;  %v686_v34 = vand.u32 4294901760, %v2571_v26  ;;  %v289_v49 = vld [vmem:[#allocation2 + $0xc8] sm:$0xff]  ;;  %v2590_v57 = vsub.f32 %v291_v28, %v2577_v35  ;;  %v2677_v28 = vand.u32 4294901760, %v271_v61 }
  0x43   :  { %488 = vmatpush.msrb.mxu0 %v2454_v33  ;;  %519 = vmatpush.msrb.mxu1 %v2385_v13  ;;  %v2580_v36 = vsub.f32 %v293_v20, %v2573_v27 }
  0x44   :  { %615 = vmatpush.msrb.mxu3 %v2334_v50  ;;  %552 = vmatpush.msrb.mxu2 %v363_v1  ;;  %v687_v50 = vsub.f32 %v2571_v26, %v686_v34  ;;  %v698_v63 = vand.u32 4294901760, %v2590_v57 }
  0x45   :  { %491 = vmatpush.msrb.mxu0 %v2464_v40  ;;  %521 = vmatpush.msrb.mxu1 %v2403_v23 }
  0x46   :  { %617 = vmatpush.msrb.mxu3 %v2336_v51  ;;  %556 = vmatpush.msrb.mxu2 %v369_v2  ;;  %v692_v51 = vand.u32 4294901760, %v2580_v36  ;;  %v688_v59 = vand.u32 4294901760, %v687_v50  ;;  %v285_v2 = vld [vmem:[#allocation2 + $0xa8] sm:$0xff]  ;;  %v699_v7 = vsub.f32 %v2590_v57, %v698_v63 }
  0x47   :  { %523 = vmatpush.msrb.mxu1 %v2410_v46  ;;  %644 = vmatpush.msra.mxu0 %v2567_v19  ;;  %v269_v50 = vld [vmem:[#allocation2 + $0x28] sm:$0xff] }
  0x48   :  { %619 = vmatpush.msrb.mxu3 %v2339_v56  ;;  %560 = vmatpush.msrb.mxu2 %v375_v6  ;;  %v2587_v56 = vand.u32 4294901760, %v289_v49 }
  0x49   :  { %525 = vmatpush.msrb.mxu1 %v2423_v53  ;;  %646 = vmatpush.msra.mxu0 %v2573_v27 }
  0x4a   :  { %621 = vmatpush.msrb.mxu3 %v2350_v60  ;;  %564 = vmatpush.msrb.mxu2 %v381_v10  ;;  %v693_v60 = vsub.f32 %v2580_v36, %v692_v51  ;;  %v2600_v1 = vsub.f32 %v289_v49, %v2587_v56  ;;  %v2606_v10 = vand.u32 4294901760, %v285_v2  ;;  %v2680_v49 = vsub.f32 %v273_v8, %v2667_v52 }
  0x4b   :  { %527 = vmatpush.msrb.mxu1 %v2433_v25  ;;  %648 = vmatpush.msra.mxu0 %v2577_v35 }
  0x4c   :  { %623 = vmatpush.msrb.mxu3 %v2356_v0  ;;  %568 = vmatpush.msrb.mxu2 %v387_v37  ;;  %v2597_v0 = vand.u32 4294901760, %v287_v58  ;;  %v694_v6 = vand.u32 4294901760, %v693_v60  ;;  %v283_v37 = vld [vmem:[#allocation2 + $0x98] sm:$0xff]  ;;  %v2617_v15 = vsub.f32 %v285_v2, %v2606_v10  ;;  %v2686_v60 = vand.u32 4294901760, %v269_v50 }
  0x4d   :  { %529 = vmatpush.msrb.mxu1 %v2445_v30  ;;  %650 = vmatpush.msra.mxu0 %v2587_v56  ;;  %v2689_v2 = vsub.f32 %v271_v61, %v2677_v28 }
  0x4e   :  { %625 = vmatpush.msrb.mxu3 %v2370_v12  ;;  %572 = vmatpush.msrb.mxu2 %v393_v42  ;;  %v2609_v11 = vsub.f32 %v287_v58, %v2597_v0  ;;  %v704_v12 = vand.u32 4294901760, %v2600_v1  ;;  %v2614_v42 = vand.u32 4294901760, %v283_v37  ;;  %v716_v48 = vand.u32 4294901760, %v2617_v15 }
  0x4f   :  { %689 = vmatpush.msra.mxu1 %v688_v59  ;;  %652 = vmatpush.msra.mxu0 %v2597_v0 }
  0x50   :  { %627 = vmatpush.msrb.mxu3 %v2385_v13  ;;  %576 = vmatpush.msrb.mxu2 %v399_v47  ;;  %v700_v13 = vand.u32 4294901760, %v699_v7  ;;  %v710_v38 = vand.u32 4294901760, %v2609_v11  ;;  %v267_v7 = vld [vmem:[#allocation2 + $0x18] sm:$0xff] }
  0x51   :  { %695 = vmatpush.msra.mxu1 %v694_v6  ;;  %654 = vmatpush.msra.mxu0 %v2606_v10  ;;  %v752_v6 = vand.u32 4294901760, %v2680_v49 }
  0x52   :  { %629 = vmatpush.msrb.mxu3 %v2403_v23  ;;  %580 = vmatpush.msrb.mxu2 %v405_v54  ;;  %v705_v23 = vsub.f32 %v2600_v1, %v704_v12  ;;  %v711_v47 = vsub.f32 %v2609_v11, %v710_v38  ;;  %v2630_v54 = vsub.f32 %v283_v37, %v2614_v42 }
  0x53   :  { %701 = vmatpush.msra.mxu1 %v700_v13  ;;  %656 = vmatpush.msra.mxu0 %v2614_v42  ;;  %v758_v13 = vand.u32 4294901760, %v2689_v2 }
  0x54   :  { %631 = vmatpush.msrb.mxu3 %v2410_v46  ;;  %584 = vmatpush.msrb.mxu2 %v411_v9  ;;  %v281_v46 = vld [vmem:[#allocation2 + $0x88] sm:$0xff]  ;;  %v706_v55 = vand.u32 4294901760, %v705_v23  ;;  %v712_v62 = vand.u32 4294901760, %v711_v47  ;;  %v717_v9 = vsub.f32 %v2617_v15, %v716_v48  ;;  %v722_v29 = vand.u32 4294901760, %v2630_v54 }
  0x55   :  { %v2694_v23 = vand.u32 4294901760, %v267_v7  ;;  %v753_v47 = vsub.f32 %v2680_v49, %v752_v6 }
  0x56   :  { %633 = vmatpush.msrb.mxu3 %v2423_v53  ;;  %588 = vmatpush.msrb.mxu2 %v417_v32  ;;  %v2627_v53 = vand.u32 4294901760, %v281_v46  ;;  %v718_v3 = vand.u32 4294901760, %v717_v9  ;;  %v723_v32 = vsub.f32 %v2630_v54, %v722_v29 }
  0x57   :  { %707 = vmatpush.msra.mxu1 %v706_v55  ;;  %v265_v55 = vld [vmem:[#allocation2 + $0x8] sm:$0xff] }
  0x58   :  { %635 = vmatpush.msrb.mxu3 %v2433_v25  ;;  %592 = vmatpush.msrb.mxu2 %v423_v39  ;;  %v279_v25 = vld [vmem:[#allocation2 + $0x78] sm:$0xff]  ;;  %v2640_v22 = vsub.f32 %v281_v46, %v2627_v53  ;;  %v724_v40 = vand.u32 4294901760, %v723_v32  ;;  %v2697_v46 = vsub.f32 %v269_v50, %v2686_v60  ;;  %v2707_v9 = vand.u32 4294901760, %v265_v55 }
  0x59   :  { %658 = vmatpush.msra.mxu0 %v2627_v53  ;;  %v2637_v31 = vand.u32 4294901760, %v279_v25  ;;  %713 = vmatpush.msra.mxu1 %v712_v62  ;;  %v275_v39 = vld [vmem:[#allocation2 + $0x58] sm:$0xff] }
  0x5a   :  { %637 = vmatpush.msrb.mxu3 %v2445_v30  ;;  %596 = vmatpush.msrb.mxu2 %v429_v43  ;;  %v277_v30 = vld [vmem:[#allocation2 + $0x68] sm:$0xff]  ;;  %v728_v4 = vand.u32 4294901760, %v2640_v22  ;;  %v2654_v5 = vand.u32 4294901760, %v275_v39  ;;  %v764_v62 = vand.u32 4294901760, %v2697_v46 }
  0x5b   :  { %660 = vmatpush.msra.mxu0 %v2637_v31  ;;  %v2646_v33 = vand.u32 4294901760, %v277_v30  ;;  %v2649_v21 = vsub.f32 %v279_v25, %v2637_v31  ;;  %719 = vmatpush.msra.mxu1 %v718_v3  ;;  %v759_v25 = vsub.f32 %v2689_v2, %v758_v13  ;;  %v754_v3 = vand.u32 4294901760, %v753_v47 }
  0x5c   :  { %600 = vmatpush.msrb.mxu2 %v435_v45  ;;  %v729_v44 = vsub.f32 %v2640_v22, %v728_v4  ;;  %v2670_v16 = vsub.f32 %v275_v39, %v2654_v5  ;;  %v765_v39 = vsub.f32 %v2697_v46, %v764_v62 }
  0x5d   :  { %662 = vmatpush.msra.mxu0 %v2646_v33  ;;  %v734_v41 = vand.u32 4294901760, %v2649_v21  ;;  %v2657_v43 = vsub.f32 %v277_v30, %v2646_v33  ;;  %725 = vmatpush.msra.mxu1 %v724_v40  ;;  %v2710_v30 = vsub.f32 %v267_v7, %v2694_v23  ;;  %v760_v32 = vand.u32 4294901760, %v759_v25 }
  0x5e   :  { %v730_v24 = vand.u32 4294901760, %v729_v44  ;;  %v746_v20 = vand.u32 4294901760, %v2670_v16  ;;  %v2718_v44 = vsub.f32 %v265_v55, %v2707_v9  ;;  %v766_v8 = vand.u32 4294901760, %v765_v39 }
  0x5f   :  { %v735_v45 = vsub.f32 %v2649_v21, %v734_v41  ;;  %664 = vmatpush.msra.mxu0 %v2654_v5  ;;  %v740_v14 = vand.u32 4294901760, %v2657_v43  ;;  %v770_v40 = vand.u32 4294901760, %v2710_v30 }
  0x60   :  { %731 = vmatpush.msra.mxu1 %v730_v24  ;;  %v747_v59 = vsub.f32 %v2670_v16, %v746_v20  ;;  %v3594_v24 = vand.u32 4294901760, %v2718_v44 }
  0x61   :  { %v736_v17 = vand.u32 4294901760, %v735_v45  ;;  %v741_v18 = vsub.f32 %v2657_v43, %v740_v14  ;;  %666 = vmatpush.msra.mxu0 %v2667_v52  ;;  %v771_v45 = vsub.f32 %v2710_v30, %v770_v40 }
  0x62   :  { %v748_v37 = vand.u32 4294901760, %v747_v59 }
  0x63   :  { %v742_v58 = vand.u32 4294901760, %v741_v18  ;;  %668 = vmatpush.msra.mxu0 %v2677_v28  ;;  %737 = vmatpush.msra.mxu1 %v736_v17  ;;  %v772_v61 = vand.u32 4294901760, %v771_v45  ;;  %v777_v17 = vsub.f32 %v2718_v44, %v3594_v24 }
  0x65   :  { %670 = vmatpush.msra.mxu0 %v2686_v60  ;;  %743 = vmatpush.msra.mxu1 %v742_v58  ;;  %v778_v18 = vand.u32 4294901760, %v777_v17  ;;  %v2093_v58 = vld [vmem:[%s3586_s2] ss:$0 sm:$0xff] }
  0x67   :  { %672 = vmatpush.msra.mxu0 %v2694_v23  ;;  %749 = vmatpush.msra.mxu1 %v748_v37 }
  0x69   :  { %674 = vmatpush.msra.mxu0 %v2707_v9  ;;  %755 = vmatpush.msra.mxu1 %v754_v3 }
  0x6b   :  { %761 = vmatpush.msra.mxu1 %v760_v32 }
  0x6d   :  { %767 = vmatpush.msra.mxu1 %v766_v8 }
  0x6f   :  { %773 = vmatpush.msra.mxu1 %v772_v61 }
  0x71   :  { %779 = vmatpush.msra.mxu1 %v778_v18 }
  0x97   :  { %v104_v50 = vpop.f32.mrf.mxu0 }
  0x98   :  { %v105_v7 = vadd.f32 %v2093_v58, %v104_v50 }
  0x9b   :  { %v145_v59 = vpop.f32.mrf.mxu1 }
  0x9c   :  { %v146_v47 = vadd.f32 %v145_v59, %v105_v7  ;;  %v990_v59 = vld [vmem:[#allocation5 + $0x20] sm:$0xff] }
  0x9f   :  { %v175_v37 = vpop.f32.mrf.mxu0 }
  0xa0   :  { %v176_v25 = vadd.f32 %v175_v37, %v146_v47 }
  0xa3   :  { %v202_v55 = vpop.f32.mrf.mxu1 }
  0xa4   :  { %v203_v3 = vadd.f32 %v202_v55, %v176_v25  ;;  %v989_v55 = vld [vmem:[#allocation5 + $0x18] sm:$0xff] }
  0xa7   :  { %v235_v32 = vpop.f32.mrf.mxu0 }
  0xa8   :  { %v236_v39 = vadd.f32 %v235_v32, %v203_v3  ;;  %v2907_v32 = vand.u32 4294901760, %v990_v59 }
  0xab   :  { %v260_v45 = vpop.f32.mrf.mxu1 }
  0xac   :  { %v261_v24 = vadd.f32 %v260_v45, %v236_v39  ;;  %v988_v39 = vld [vmem:[#allocation5 + $0x10] sm:$0xff] }
  0xae   :  { %v263_v8 = vmax.f32 %v261_v24, 0.0 }
  0xb0   :  { %v2730_v17 = vand.u32 4294901760, %v263_v8 }
  0xb2   :  { %v2733_v61 = vsub.f32 %v263_v8, %v2730_v17  ;;  %440 = vmatmul.f32.vlgmr.msra.gmra.mxu3 %v2730_v17 }
  0xb3   :  { %840 = vmatpush.msra.mxu3 %v2567_v19 }
  0xb4   :  { %494 = vmatmul.f32.vlgmr.msrb.gmra.mxu0 %v2733_v61  ;;  %v2739_v18 = vand.u32 4294901760, %v2733_v61 }
  0xb5   :  { %842 = vmatpush.msra.mxu3 %v2573_v27  ;;  %881 = vmatpush.msrb.mxu0 %v686_v34  ;;  %v999_v34 = vld [vmem:[#allocation5 + $0x68] sm:$0xff] }
  0xb6   :  { %533 = vmatmul.f32.vlgmr.msrb.gmra.mxu1 %v2739_v18  ;;  %v337_v24 = vsub.f32 %v2733_v61, %v2739_v18 }
  0xb7   :  { %844 = vmatpush.msra.mxu3 %v2577_v35  ;;  %885 = vmatpush.msrb.mxu0 %v692_v51 }
  0xb8   :  { %948 = vmatpush.msrb.mxu1 %v2567_v19  ;;  %v338_v50 = vand.u32 4294901760, %v337_v24  ;;  %v1001_v19 = vld [vmem:[#allocation5 + $0x78] sm:$0xff]  ;;  %v987_v24 = vld [vmem:[#allocation5 + $0x8] sm:$0xff] }
  0xb9   :  { %846 = vmatpush.msra.mxu3 %v2587_v56  ;;  %889 = vmatpush.msrb.mxu0 %v698_v63 }
  0xba   :  { %950 = vmatpush.msrb.mxu1 %v2573_v27  ;;  %339 = vmatmul.f32.vlgmr.msra.gmra.mxu2 %v338_v50  ;;  %v2778_v27 = vand.u32 4294901760, %v1001_v19 }
  0xbb   :  { %639 = vmatmul.f32.vlgmr.msrb.gmra.mxu3 %v2730_v17  ;;  %787 = vmatpush.msra.mxu2 %v2571_v26  ;;  %v1000_v26 = vld [vmem:[#allocation5 + $0x70] sm:$0xff] }
  0xbc   :  { %848 = vmatpush.msra.mxu3 %v2597_v0  ;;  %893 = vmatpush.msrb.mxu0 %v704_v12  ;;  %v2793_v51 = vsub.f32 %v1001_v19, %v2778_v27  ;;  %v2929_v19 = vsub.f32 %v990_v59, %v2907_v32 }
  0xbd   :  { %952 = vmatpush.msrb.mxu1 %v2577_v35  ;;  %680 = vmatmul.f32.vlgmr.msra.gmra.mxu0 %v338_v50  ;;  %v2785_v35 = vand.u32 4294901760, %v1000_v26 }
  0xbe   :  { %790 = vmatpush.msra.mxu2 %v2580_v36  ;;  %850 = vmatpush.msra.mxu3 %v2606_v10  ;;  %v998_v36 = vld [vmem:[#allocation5 + $0x60] sm:$0xff] }
  0xbf   :  { %897 = vmatpush.msrb.mxu0 %v710_v38  ;;  %954 = vmatpush.msrb.mxu1 %v2587_v56  ;;  %v2795_v56 = vand.u32 4294901760, %v999_v34  ;;  %v2803_v63 = vsub.f32 %v1000_v26, %v2785_v35  ;;  %v995_v38 = vld [vmem:[#allocation5 + $0x48] sm:$0xff]  ;;  %v2931_v26 = vand.u32 4294901760, %v988_v39 }
  0xc0   :  { %781 = vmatmul.f32.vlgmr.msra.gmra.mxu1 %v2730_v17  ;;  %793 = vmatpush.msra.mxu2 %v2590_v57  ;;  %v997_v57 = vld [vmem:[#allocation5 + $0x58] sm:$0xff] }
  0xc1   :  { %852 = vmatpush.msra.mxu3 %v2614_v42  ;;  %901 = vmatpush.msrb.mxu0 %v716_v48  ;;  %v2816_v12 = vand.u32 4294901760, %v997_v57 }
  0xc2   :  { %956 = vmatpush.msrb.mxu1 %v2597_v0  ;;  %796 = vmatpush.msra.mxu2 %v2600_v1  ;;  %v2805_v0 = vand.u32 4294901760, %v998_v36  ;;  %v996_v1 = vld [vmem:[#allocation5 + $0x50] sm:$0xff] }
  0xc3   :  { %854 = vmatpush.msra.mxu3 %v2627_v53  ;;  %905 = vmatpush.msrb.mxu0 %v722_v29  ;;  %v2827_v48 = vand.u32 4294901760, %v996_v1 }
  0xc4   :  { %958 = vmatpush.msrb.mxu1 %v2606_v10  ;;  %602 = vmatmul.f32.vlgmr.msrb.gmra.mxu2 %v2730_v17  ;;  %v1065_v10 = vand.u32 4294901760, %v2793_v51 }
  0xc5   :  { %799 = vmatpush.msra.mxu2 %v2609_v11  ;;  %856 = vmatpush.msra.mxu3 %v2637_v31  ;;  %v2814_v11 = vsub.f32 %v999_v34, %v2795_v56 }
  0xc6   :  { %909 = vmatpush.msrb.mxu0 %v728_v4  ;;  %960 = vmatpush.msrb.mxu1 %v2614_v42  ;;  %v1071_v42 = vand.u32 4294901760, %v2803_v63  ;;  %v1066_v29 = vsub.f32 %v2793_v51, %v1065_v10 }
  0xc7   :  { %802 = vmatpush.msra.mxu2 %v2617_v15  ;;  %858 = vmatpush.msra.mxu3 %v2646_v33  ;;  %v2825_v15 = vsub.f32 %v998_v36, %v2805_v0  ;;  %v986_v36 = vld [vmem:[#allocation5] sm:$0xff] }
  0xc8   :  { %913 = vmatpush.msrb.mxu0 %v734_v41  ;;  %962 = vmatpush.msrb.mxu1 %v2627_v53  ;;  %v994_v53 = vld [vmem:[#allocation5 + $0x40] sm:$0xff]  ;;  %v1072_v4 = vsub.f32 %v2803_v63, %v1071_v42 }
  0xc9   :  { %805 = vmatpush.msra.mxu2 %v2630_v54  ;;  %860 = vmatpush.msra.mxu3 %v2654_v5  ;;  %v2831_v54 = vand.u32 4294901760, %v995_v38  ;;  %v1083_v41 = vand.u32 4294901760, %v2825_v15 }
  0xca   :  { %917 = vmatpush.msrb.mxu0 %v740_v14  ;;  %964 = vmatpush.msrb.mxu1 %v2637_v31  ;;  %v1077_v31 = vand.u32 4294901760, %v2814_v11  ;;  %v992_v14 = vld [vmem:[#allocation5 + $0x30] sm:$0xff] }
  0xcb   :  { %808 = vmatpush.msra.mxu2 %v2640_v22  ;;  %862 = vmatpush.msra.mxu3 %v2667_v52  ;;  %v2841_v22 = vsub.f32 %v997_v57, %v2816_v12  ;;  %v2883_v58 = vand.u32 4294901760, %v992_v14 }
  0xcc   :  { %921 = vmatpush.msrb.mxu0 %v746_v20  ;;  %966 = vmatpush.msrb.mxu1 %v2646_v33  ;;  %v2845_v33 = vand.u32 4294901760, %v994_v53 }
  0xcd   :  { %811 = vmatpush.msra.mxu2 %v2649_v21  ;;  %864 = vmatpush.msra.mxu3 %v2677_v28  ;;  %v993_v21 = vld [vmem:[#allocation5 + $0x38] sm:$0xff]  ;;  %v1089_v20 = vand.u32 4294901760, %v2841_v22  ;;  %v2905_v3 = vsub.f32 %v992_v14, %v2883_v58  ;;  %v2953_v14 = vsub.f32 %v988_v39, %v2931_v26 }
  0xce   :  { %925 = vmatpush.msrb.mxu0 %v752_v6  ;;  %968 = vmatpush.msrb.mxu1 %v2654_v5  ;;  %v2855_v5 = vsub.f32 %v996_v1, %v2827_v48  ;;  %v991_v6 = vld [vmem:[#allocation5 + $0x28] sm:$0xff] }
  0xcf   :  { %814 = vmatpush.msra.mxu2 %v2657_v43  ;;  %866 = vmatpush.msra.mxu3 %v2686_v60  ;;  %v2860_v43 = vsub.f32 %v995_v38, %v2831_v54  ;;  %v1090_v7 = vsub.f32 %v2841_v22, %v1089_v20  ;;  %v2895_v47 = vand.u32 4294901760, %v991_v6  ;;  %v1119_v50 = vand.u32 4294901760, %v2905_v3 }
  0xd0   :  { %929 = vmatpush.msrb.mxu0 %v758_v13  ;;  %970 = vmatpush.msrb.mxu1 %v2667_v52  ;;  %v1067_v52 = vand.u32 4294901760, %v1066_v29  ;;  %v3597_v13 = vand.u32 4294901760, %v2718_v44 }
  0xd1   :  { %817 = vmatpush.msra.mxu2 %v2670_v16  ;;  %868 = vmatpush.msra.mxu3 %v2694_v23  ;;  %v1078_v16 = vsub.f32 %v2814_v11, %v1077_v31  ;;  %v1091_v45 = vand.u32 4294901760, %v1090_v7 }
  0xd2   :  { %933 = vmatpush.msrb.mxu0 %v764_v62  ;;  %972 = vmatpush.msrb.mxu1 %v2677_v28  ;;  %v2869_v28 = vand.u32 4294901760, %v993_v21  ;;  %v1084_v62 = vsub.f32 %v2825_v15, %v1083_v41 }
  0xd3   :  { %820 = vmatpush.msra.mxu2 %v2680_v49  ;;  %870 = vmatpush.msra.mxu3 %v2707_v9  ;;  %v2874_v49 = vsub.f32 %v994_v53, %v2845_v33  ;;  %v2943_v53 = vand.u32 4294901760, %v987_v24 }
  0xd4   :  { %937 = vmatpush.msrb.mxu0 %v770_v40  ;;  %974 = vmatpush.msrb.mxu1 %v2686_v60  ;;  %v1073_v60 = vand.u32 4294901760, %v1072_v4  ;;  %v1095_v40 = vand.u32 4294901760, %v2855_v5  ;;  %v2893_v37 = vsub.f32 %v993_v21, %v2869_v28  ;;  %v1120_v21 = vsub.f32 %v2905_v3, %v1119_v50 }
  0xd5   :  { %874 = vmatmul.f32.vlgmr.msra.gmra.mxu3 %v2739_v18  ;;  %823 = vmatpush.msra.mxu2 %v2689_v2  ;;  %v1101_v2 = vand.u32 4294901760, %v2860_v43  ;;  %v2919_v18 = vand.u32 4294901760, %v989_v55  ;;  %v1131_v4 = vand.u32 4294901760, %v2929_v19 }
  0xd6   :  { %941 = vmatpush.msrb.mxu0 %v3597_v13  ;;  %976 = vmatpush.msrb.mxu1 %v2694_v23  ;;  %v1079_v23 = vand.u32 4294901760, %v1078_v16  ;;  %v1096_v25 = vsub.f32 %v2855_v5, %v1095_v40  ;;  %v1113_v8 = vand.u32 4294901760, %v2893_v37 }
  0xd7   :  { %943 = vmatmul.f32.vlgmr.msrb.gmra.mxu0 %v2730_v17  ;;  %826 = vmatpush.msra.mxu2 %v2697_v46  ;;  %v1107_v46 = vand.u32 4294901760, %v2874_v49  ;;  %v2941_v38 = vsub.f32 %v989_v55, %v2919_v18  ;;  %v1132_v59 = vsub.f32 %v2929_v19, %v1131_v4 }
  0xd8   :  { %978 = vmatpush.msrb.mxu1 %v2707_v9  ;;  %1068 = vmatpush.msrb.mxu3 %v1067_v52  ;;  %v1085_v9 = vand.u32 4294901760, %v1084_v62  ;;  %v1114_v57 = vsub.f32 %v2893_v37, %v1113_v8  ;;  %v2955_v52 = vand.u32 4294901760, %v986_v36  ;;  %v1121_v62 = vand.u32 4294901760, %v1120_v21 }
  0xd9   :  { %980 = vmatmul.f32.vlgmr.msrb.gmra.mxu1 %v2730_v17  ;;  %829 = vmatpush.msra.mxu2 %v2710_v30  ;;  %v1102_v30 = vsub.f32 %v2860_v43, %v1101_v2  ;;  %v2917_v17 = vsub.f32 %v991_v6, %v2895_v47  ;;  %v1137_v13 = vand.u32 4294901760, %v2941_v38 }
  0xda   :  { %1074 = vmatpush.msrb.mxu3 %v1073_v60  ;;  %1219 = vmatpush.msra.mxu1 %v2778_v27  ;;  %v1115_v16 = vand.u32 4294901760, %v1114_v57  ;;  %v2965_v60 = vsub.f32 %v987_v24, %v2943_v53  ;;  %v2975_v7 = vsub.f32 %v986_v36, %v2955_v52 }
  0xdb   :  { %832 = vmatpush.msra.mxu2 %v2718_v44  ;;  %1166 = vmatpush.msra.mxu0 %v2793_v51  ;;  %v1108_v44 = vsub.f32 %v2874_v49, %v1107_v46  ;;  %v1103_v34 = vand.u32 4294901760, %v1102_v30  ;;  %v1125_v1 = vand.u32 4294901760, %v2917_v17  ;;  %v1133_v30 = vand.u32 4294901760, %v1132_v59  ;;  %v1016_v51 = vld [vmem:[#allocation5 + $0xf0] sm:$0xff] }
  0xdc   :  { %835 = vmatmul.f32.vlgmr.msra.gmra.mxu2 %v2733_v61  ;;  %1080 = vmatpush.msrb.mxu3 %v1079_v23  ;;  %v1097_v61 = vand.u32 4294901760, %v1096_v25  ;;  %v1143_v23 = vand.u32 4294901760, %v2953_v14  ;;  %v1149_v25 = vand.u32 4294901760, %v2965_v60 }
  0xdd   :  { %1221 = vmatpush.msra.mxu1 %v2785_v35  ;;  %1023 = vmatpush.msrb.mxu2 %v2778_v27  ;;  %v1109_v29 = vand.u32 4294901760, %v1108_v44  ;;  %v1126_v6 = vsub.f32 %v2917_v17, %v1125_v1 }
  0xde   :  { %1086 = vmatpush.msrb.mxu3 %v1085_v9  ;;  %1169 = vmatpush.msra.mxu0 %v2803_v63  ;;  %v1138_v9 = vsub.f32 %v2941_v38, %v1137_v13  ;;  %v1144_v39 = vsub.f32 %v2953_v14, %v1143_v23  ;;  %v1150_v24 = vsub.f32 %v2965_v60, %v1149_v25  ;;  %v3057_v63 = vand.u32 4294901760, %v1016_v51 }
  0xdf   :  { %1223 = vmatpush.msra.mxu1 %v2795_v56  ;;  %1025 = vmatpush.msrb.mxu2 %v2785_v35  ;;  %v1127_v55 = vand.u32 4294901760, %v1126_v6 }
  0xe0   :  { %1092 = vmatpush.msrb.mxu3 %v1091_v45  ;;  %1172 = vmatpush.msra.mxu0 %v2814_v11  ;;  %v1155_v45 = vand.u32 4294901760, %v2975_v7  ;;  %v1139_v44 = vand.u32 4294901760, %v1138_v9  ;;  %v1151_v36 = vand.u32 4294901760, %v1150_v24  ;;  %v3065_v11 = vsub.f32 %v1016_v51, %v3057_v63 }
  0xe1   :  { %1225 = vmatpush.msra.mxu1 %v2805_v0  ;;  %1027 = vmatpush.msrb.mxu2 %v2795_v56 }
  0xe2   :  { %1098 = vmatpush.msrb.mxu3 %v1097_v61  ;;  %1175 = vmatpush.msra.mxu0 %v2825_v15  ;;  %v1145_v61 = vand.u32 4294901760, %v1144_v39  ;;  %v1006_v39 = vld [vmem:[#allocation5 + $0xa0] sm:$0xff] }
  0xe3   :  { %1227 = vmatpush.msra.mxu1 %v2816_v12  ;;  %1029 = vmatpush.msrb.mxu2 %v2805_v0 }
  0xe4   :  { %1104 = vmatpush.msrb.mxu3 %v1103_v34  ;;  %1178 = vmatpush.msra.mxu0 %v2841_v22  ;;  %v1156_v34 = vsub.f32 %v2975_v7, %v1155_v45  ;;  %v1013_v22 = vld [vmem:[#allocation5 + $0xd8] sm:$0xff] }
  0xe5   :  { %1229 = vmatpush.msra.mxu1 %v2827_v48  ;;  %1031 = vmatpush.msrb.mxu2 %v2816_v12 }
  0xe6   :  { %1110 = vmatpush.msrb.mxu3 %v1109_v29  ;;  %1181 = vmatpush.msra.mxu0 %v2855_v5  ;;  %v1157_v57 = vand.u32 4294901760, %v1156_v34 }
  0xe7   :  { %1231 = vmatpush.msra.mxu1 %v2831_v54  ;;  %1033 = vmatpush.msrb.mxu2 %v2827_v48 }
  0xe8   :  { %1116 = vmatpush.msrb.mxu3 %v1115_v16  ;;  %1184 = vmatpush.msra.mxu0 %v2860_v43  ;;  %v1008_v16 = vld [vmem:[#allocation5 + $0xb0] sm:$0xff] }
  0xe9   :  { %1233 = vmatpush.msra.mxu1 %v2845_v33  ;;  %1035 = vmatpush.msrb.mxu2 %v2831_v54  ;;  %v3152_v59 = vand.u32 4294901760, %v1008_v16 }
  0xea   :  { %1122 = vmatpush.msrb.mxu3 %v1121_v62  ;;  %1187 = vmatpush.msra.mxu0 %v2874_v49 }
  0xeb   :  { %1235 = vmatpush.msra.mxu1 %v2869_v28  ;;  %1037 = vmatpush.msrb.mxu2 %v2845_v33 }
  0xec   :  { %1128 = vmatpush.msrb.mxu3 %v1127_v55  ;;  %1190 = vmatpush.msra.mxu0 %v2893_v37 }
  0xed   :  { %1237 = vmatpush.msra.mxu1 %v2883_v58  ;;  %1039 = vmatpush.msrb.mxu2 %v2869_v28 }
  0xee   :  { %1134 = vmatpush.msrb.mxu3 %v1133_v30  ;;  %1193 = vmatpush.msra.mxu0 %v2905_v3  ;;  %v3162_v30 = vsub.f32 %v1008_v16, %v3152_v59 }
  0xef   :  { %1239 = vmatpush.msra.mxu1 %v2895_v47  ;;  %1041 = vmatpush.msrb.mxu2 %v2883_v58 }
  0xf0   :  { %1140 = vmatpush.msrb.mxu3 %v1139_v44  ;;  %1196 = vmatpush.msra.mxu0 %v2917_v17  ;;  %v1460_v34 = vand.u32 4294901760, %v3162_v30 }
  0xf1   :  { %1241 = vmatpush.msra.mxu1 %v2907_v32  ;;  %1043 = vmatpush.msrb.mxu2 %v2895_v47 }
  0xf2   :  { %1146 = vmatpush.msrb.mxu3 %v1145_v61  ;;  %1199 = vmatpush.msra.mxu0 %v2929_v19  ;;  %v3171_v61 = vand.u32 4294901760, %v1006_v39 }
  0xf3   :  { %1243 = vmatpush.msra.mxu1 %v2919_v18  ;;  %1045 = vmatpush.msrb.mxu2 %v2907_v32 }
  0xf4   :  { %1152 = vmatpush.msrb.mxu3 %v1151_v36  ;;  %1202 = vmatpush.msra.mxu0 %v2941_v38  ;;  %v1005_v36 = vld [vmem:[#allocation5 + $0x98] sm:$0xff]  ;;  %v3177_v51 = vsub.f32 %v1006_v39, %v3171_v61 }
  0xf5   :  { %1245 = vmatpush.msra.mxu1 %v2931_v26  ;;  %1047 = vmatpush.msrb.mxu2 %v2919_v18 }
  0xf6   :  { %1158 = vmatpush.msrb.mxu3 %v1157_v57  ;;  %1205 = vmatpush.msra.mxu0 %v2953_v14 }
  0xf7   :  { %1247 = vmatpush.msra.mxu1 %v2943_v53  ;;  %1049 = vmatpush.msrb.mxu2 %v2931_v26 }
  0xf8   :  { %1327 = vmatpush.msra.mxu3 %v2778_v27  ;;  %1208 = vmatpush.msra.mxu0 %v2965_v60  ;;  %v1017_v27 = vld [vmem:[#allocation5 + $0xf8] sm:$0xff] }
  0xf9   :  { %1249 = vmatpush.msra.mxu1 %v2955_v52  ;;  %1051 = vmatpush.msrb.mxu2 %v2943_v53 }
  0xfa   :  { %1329 = vmatpush.msra.mxu3 %v2785_v35  ;;  %1211 = vmatpush.msra.mxu0 %v2975_v7  ;;  %v3049_v35 = vand.u32 4294901760, %v1017_v27 }
  0xfb   :  { %1053 = vmatpush.msrb.mxu2 %v2955_v52 }
  0xfc   :  { %1331 = vmatpush.msra.mxu3 %v2795_v56  ;;  %v3055_v56 = vsub.f32 %v1017_v27, %v3049_v35  ;;  %1364 = vmatpush.msrb.mxu0 %v3049_v35 }
  0xfd   :  { %1260 = vmatpush.msra.mxu2 %v1065_v10 }
  0xfe   :  { %1333 = vmatpush.msra.mxu3 %v2805_v0  ;;  %v1015_v0 = vld [vmem:[#allocation5 + $0xe8] sm:$0xff]  ;;  %v1406_v10 = vand.u32 4294901760, %v3055_v56  ;;  %1366 = vmatpush.msrb.mxu0 %v3057_v63 }
  0xff   :  { %1264 = vmatpush.msra.mxu2 %v1071_v42  ;;  %v1014_v42 = vld [vmem:[#allocation5 + $0xe0] sm:$0xff] }
 0x100   :  { %1335 = vmatpush.msra.mxu3 %v2816_v12  ;;  %v3067_v12 = vand.u32 4294901760, %v1015_v0  ;;  %v1407_v15 = vsub.f32 %v3055_v56, %v1406_v10 }
 0x101   :  { %1268 = vmatpush.msra.mxu2 %v1077_v31  ;;  %v3080_v31 = vand.u32 4294901760, %v1014_v42 }
 0x102   :  { %1337 = vmatpush.msra.mxu3 %v2827_v48  ;;  %v1412_v48 = vand.u32 4294901760, %v3065_v11  ;;  %1368 = vmatpush.msrb.mxu0 %v3067_v12 }
 0x103   :  { %1272 = vmatpush.msra.mxu2 %v1083_v41  ;;  %v3091_v43 = vsub.f32 %v1014_v42, %v3080_v31  ;;  %v1461_v42 = vsub.f32 %v3162_v30, %v1460_v34 }
 0x104   :  { %1339 = vmatpush.msra.mxu3 %v2831_v54  ;;  %v3078_v54 = vsub.f32 %v1015_v0, %v3067_v12  ;;  %v1413_v41 = vsub.f32 %v3065_v11, %v1412_v48  ;;  %1370 = vmatpush.msrb.mxu0 %v3080_v31  ;;  %v3179_v0 = vand.u32 4294901760, %v1005_v36 }
 0x105   :  { %1276 = vmatpush.msra.mxu2 %v1089_v20  ;;  %v3095_v20 = vand.u32 4294901760, %v1013_v22 }
 0x106   :  { %1341 = vmatpush.msra.mxu3 %v2845_v33  ;;  %v1408_v33 = vand.u32 4294901760, %v1407_v15  ;;  %v1418_v5 = vand.u32 4294901760, %v3078_v54  ;;  %v1414_v49 = vand.u32 4294901760, %v1413_v41  ;;  %v1004_v15 = vld [vmem:[#allocation5 + $0x90] sm:$0xff]  ;;  %v3190_v41 = vsub.f32 %v1005_v36, %v3179_v0 }
 0x107   :  { %1280 = vmatpush.msra.mxu2 %v1095_v40  ;;  %v3106_v37 = vsub.f32 %v1013_v22, %v3095_v20  ;;  %1372 = vmatpush.msrb.mxu0 %v3095_v20 }
 0x108   :  { %1343 = vmatpush.msra.mxu3 %v2869_v28  ;;  %v1012_v28 = vld [vmem:[#allocation5 + $0xd0] sm:$0xff]  ;;  %1409 = vmatpush.msrb.mxu1 %v1408_v33  ;;  %v1419_v40 = vsub.f32 %v3078_v54, %v1418_v5  ;;  %v1472_v33 = vand.u32 4294901760, %v3177_v51 }
 0x109   :  { %1284 = vmatpush.msra.mxu2 %v1101_v2  ;;  %v3103_v2 = vand.u32 4294901760, %v1012_v28  ;;  %v1430_v17 = vand.u32 4294901760, %v3106_v37 }
 0x10a   :  { %1345 = vmatpush.msra.mxu3 %v2883_v58  ;;  %v1424_v58 = vand.u32 4294901760, %v3091_v43  ;;  %1415 = vmatpush.msrb.mxu1 %v1414_v49  ;;  %v1462_v49 = vand.u32 4294901760, %v1461_v42 }
 0x10b   :  { %1288 = vmatpush.msra.mxu2 %v1107_v46  ;;  %v1420_v46 = vand.u32 4294901760, %v1419_v40  ;;  %1374 = vmatpush.msrb.mxu0 %v3103_v2  ;;  %v1431_v38 = vsub.f32 %v3106_v37, %v1430_v17  ;;  %v1003_v40 = vld [vmem:[#allocation5 + $0x88] sm:$0xff] }
 0x10c   :  { %1347 = vmatpush.msra.mxu3 %v2895_v47  ;;  %v1011_v47 = vld [vmem:[#allocation5 + $0xc8] sm:$0xff]  ;;  %v1425_v3 = vsub.f32 %v3091_v43, %v1424_v58 }
 0x10d   :  { %1292 = vmatpush.msra.mxu2 %v1113_v8  ;;  %v3117_v8 = vand.u32 4294901760, %v1011_v47  ;;  %1421 = vmatpush.msrb.mxu1 %v1420_v46  ;;  %v1473_v46 = vsub.f32 %v3177_v51, %v1472_v33 }
 0x10e   :  { %1349 = vmatpush.msra.mxu3 %v2907_v32  ;;  %v3115_v32 = vsub.f32 %v1012_v28, %v3103_v2  ;;  %v3192_v28 = vand.u32 4294901760, %v1004_v15 }
 0x10f   :  { %1296 = vmatpush.msra.mxu2 %v1119_v50  ;;  %v1426_v50 = vand.u32 4294901760, %v1425_v3  ;;  %1376 = vmatpush.msrb.mxu0 %v3117_v8  ;;  %v1478_v3 = vand.u32 4294901760, %v3190_v41 }
 0x110   :  { %1351 = vmatpush.msra.mxu3 %v2919_v18  ;;  %v1010_v18 = vld [vmem:[#allocation5 + $0xc0] sm:$0xff]  ;;  %v1436_v19 = vand.u32 4294901760, %v3115_v32 }
 0x111   :  { %1300 = vmatpush.msra.mxu2 %v1125_v1  ;;  %v3127_v1 = vand.u32 4294901760, %v1010_v18  ;;  %1427 = vmatpush.msrb.mxu1 %v1426_v50  ;;  %v3202_v50 = vand.u32 4294901760, %v1003_v40 }
 0x112   :  { %1353 = vmatpush.msra.mxu3 %v2931_v26  ;;  %v3125_v26 = vsub.f32 %v1011_v47, %v3117_v8  ;;  %v1437_v29 = vsub.f32 %v3115_v32, %v1436_v19 }
 0x113   :  { %1304 = vmatpush.msra.mxu2 %v1131_v4  ;;  %v3140_v4 = vsub.f32 %v1010_v18, %v3127_v1  ;;  %1378 = vmatpush.msrb.mxu0 %v3127_v1  ;;  %v3200_v18 = vsub.f32 %v1004_v15, %v3192_v28  ;;  %v296_v15 = vld [vmem:[%s3588_s4] sm:$0x3] }
 0x114   :  { %1355 = vmatpush.msra.mxu3 %v2943_v53  ;;  %v1009_v53 = vld [vmem:[#allocation5 + $0xb8] sm:$0xff]  ;;  %v1442_v21 = vand.u32 4294901760, %v3125_v26  ;;  %v1438_v6 = vand.u32 4294901760, %v1437_v29  ;;  %v1479_v29 = vsub.f32 %v3190_v41, %v1478_v3 }
 0x115   :  { %1308 = vmatpush.msra.mxu2 %v1137_v13  ;;  %v3142_v14 = vand.u32 4294901760, %v1009_v53  ;;  %v1448_v60 = vand.u32 4294901760, %v3140_v4 }
 0x116   :  { %1357 = vmatpush.msra.mxu3 %v2955_v52  ;;  %v1432_v52 = vand.u32 4294901760, %v1431_v38  ;;  %v1443_v13 = vsub.f32 %v3125_v26, %v1442_v21  ;;  %v1002_v38 = vld [vmem:[#allocation5 + $0x80] sm:$0xff] }
 0x117   :  { %1312 = vmatpush.msra.mxu2 %v1143_v23  ;;  %v3150_v62 = vsub.f32 %v1009_v53, %v3142_v14  ;;  %v1007_v23 = vld [vmem:[#allocation5 + $0xa8] sm:$0xff]  ;;  %1380 = vmatpush.msrb.mxu0 %v3142_v14  ;;  %v1449_v55 = vsub.f32 %v3140_v4, %v1448_v60  ;;  %v1474_v53 = vand.u32 4294901760, %v1473_v46  ;;  %v3209_v16 = vand.u32 4294901760, %v1002_v38 }
 0x118   :  { %1433 = vmatpush.msrb.mxu1 %v1432_v52  ;;  %v1444_v7 = vand.u32 4294901760, %v1443_v13  ;;  %v1484_v52 = vand.u32 4294901760, %v3200_v18  ;;  %v1480_v13 = vand.u32 4294901760, %v1479_v29 }
 0x119   :  { %1316 = vmatpush.msra.mxu2 %v1149_v25  ;;  %v1454_v9 = vand.u32 4294901760, %v3150_v62  ;;  %v3159_v25 = vand.u32 4294901760, %v1007_v23  ;;  %1382 = vmatpush.msrb.mxu0 %v3152_v59 }
 0x11a   :  { %1439 = vmatpush.msrb.mxu1 %v1438_v6  ;;  %v3212_v6 = vsub.f32 %v1003_v40, %v3202_v50 }
 0x11b   :  { %1320 = vmatpush.msra.mxu2 %v1155_v45  ;;  %v1450_v45 = vand.u32 4294901760, %v1449_v55  ;;  %v1455_v44 = vsub.f32 %v3150_v62, %v1454_v9  ;;  %v3169_v24 = vsub.f32 %v1007_v23, %v3159_v25  ;;  %1384 = vmatpush.msrb.mxu0 %v3159_v25  ;;  %v1485_v23 = vsub.f32 %v3200_v18, %v1484_v52 }
 0x11c   :  { %1445 = vmatpush.msrb.mxu1 %v1444_v7  ;;  %v3219_v7 = vsub.f32 %v1002_v38, %v3209_v16  ;;  %v3596_v55 = vand.u32 4294901760, %v3212_v6 }
 0x11d   :  { %v1456_v57 = vand.u32 4294901760, %v1455_v44  ;;  %v1466_v27 = vand.u32 4294901760, %v3169_v24  ;;  %1386 = vmatpush.msrb.mxu0 %v3171_v61  ;;  %v1486_v39 = vand.u32 4294901760, %v1485_v23 }
 0x11e   :  { %1451 = vmatpush.msrb.mxu1 %v1450_v45  ;;  %v3595_v45 = vand.u32 4294901760, %v3219_v7  ;;  %v1491_v44 = vsub.f32 %v3212_v6, %v3596_v55 }
 0x11f   :  { %v1467_v22 = vsub.f32 %v3169_v24, %v1466_v27  ;;  %1388 = vmatpush.msrb.mxu0 %v3179_v0 }
 0x120   :  { %1457 = vmatpush.msrb.mxu1 %v1456_v57  ;;  %v1497_v36 = vsub.f32 %v3219_v7, %v3595_v45  ;;  %v1492_v57 = vand.u32 4294901760, %v1491_v44 }
 0x121   :  { %v1468_v47 = vand.u32 4294901760, %v1467_v22  ;;  %1390 = vmatpush.msrb.mxu0 %v3192_v28  ;;  %v298_v22 = vperm.slane %v296_v15, 0 }
 0x122   :  { %1463 = vmatpush.msrb.mxu1 %v1462_v49  ;;  %v1498_v42 = vand.u32 4294901760, %v1497_v36 }
 0x123   :  { %1392 = vmatpush.msrb.mxu0 %v3202_v50 }
 0x124   :  { %1469 = vmatpush.msrb.mxu1 %v1468_v47 }
 0x125   :  { %1394 = vmatpush.msrb.mxu0 %v3209_v16 }
 0x126   :  { %1475 = vmatpush.msrb.mxu1 %v1474_v53 }
 0x128   :  { %1481 = vmatpush.msrb.mxu1 %v1480_v13 }
 0x12a   :  { %1487 = vmatpush.msrb.mxu1 %v1486_v39 }
 0x12c   :  { %1493 = vmatpush.msrb.mxu1 %v1492_v57 }
 0x12e   :  { %1499 = vmatpush.msrb.mxu1 %v1498_v42 }
 0x131   :  { %v495_v38 = vpop.f32.mrf.mxu0 }
 0x133   :  { %v534_v29 = vpop.f32.mrf.mxu1 }
 0x135   :  { %v441_v47 = vpop.f32.mrf.mxu3 }
 0x13d   :  { %v340_v49 = vpop.f32.mrf.mxu2 }
 0x13e   :  { %v341_v40 = vadd.f32 %v340_v49, %v298_v22  ;;  %v640_v39 = vpop.f32.mrf.mxu3 }
 0x140   :  { %v442_v46 = vadd.f32 %v441_v47, %v341_v40  ;;  %v681_v40 = vpop.f32.mrf.mxu0 }
 0x142   :  { %v496_v53 = vadd.f32 %v495_v38, %v442_v46 }
 0x144   :  { %v535_v13 = vadd.f32 %v534_v29, %v496_v53  ;;  %v1713_v53 = vld [vmem:[%s3591_s7 + $0x40] sm:$0xff] }
 0x147   :  { %v603_v23 = vpop.f32.mrf.mxu2 }
 0x148   :  { %v604_v45 = vadd.f32 %v603_v23, %v535_v13 }
 0x14a   :  { %v641_v44 = vadd.f32 %v640_v39, %v604_v45  ;;  %v299_v45 = vperm.slane %v296_v15, 1  ;;  %v3406_v39 = vand.u32 4294901760, %v1713_v53 }
 0x14c   :  { %v984_v36 = vmax.f32 %v641_v44, 0.0 }
 0x14e   :  { %v1054_v57 = vand.u32 4294901760, %v984_v36 }
 0x150   :  { %v1055_v42 = vsub.f32 %v984_v36, %v1054_v57  ;;  %1160 = vmatmul.f32.vlgmr.msrb.gmra.mxu3 %v1054_v57  ;;  %v1712_v36 = vld [vmem:[%s3591_s7 + $0x38] sm:$0xff] }
 0x151   :  { %1560 = vmatpush.msrb.mxu3 %v3049_v35 }
 0x152   :  { %1214 = vmatmul.f32.vlgmr.msra.gmra.mxu0 %v1055_v42  ;;  %v1056_v55 = vand.u32 4294901760, %v1055_v42 }
 0x153   :  { %1562 = vmatpush.msrb.mxu3 %v3057_v63  ;;  %1601 = vmatpush.msra.mxu0 %v1406_v10  ;;  %v682_v10 = vadd.f32 %v681_v40, %v299_v45  ;;  %v3424_v45 = vand.u32 4294901760, %v1712_v36  ;;  %v1711_v40 = vld [vmem:[%s3591_s7 + $0x30] sm:$0xff] }
 0x154   :  { %1253 = vmatmul.f32.vlgmr.msra.gmra.mxu1 %v1056_v55  ;;  %v1057_v22 = vsub.f32 %v1055_v42, %v1056_v55 }
 0x155   :  { %1564 = vmatpush.msrb.mxu3 %v3067_v12  ;;  %1668 = vmatpush.msra.mxu1 %v3049_v35  ;;  %v782_v35 = vpop.f32.mrf.mxu1 }
 0x156   :  { %v1058_v49 = vand.u32 4294901760, %v1057_v22  ;;  %1605 = vmatpush.msra.mxu0 %v1412_v48  ;;  %v3422_v22 = vsub.f32 %v1713_v53, %v3406_v39 }
 0x157   :  { %1566 = vmatpush.msrb.mxu3 %v3080_v31  ;;  %1670 = vmatpush.msra.mxu1 %v3057_v63 }
 0x158   :  { %1059 = vmatmul.f32.vlgmr.msrb.gmra.mxu2 %v1058_v49  ;;  %1359 = vmatmul.f32.vlgmr.msra.gmra.mxu3 %v1054_v57 }
 0x159   :  { %1507 = vmatpush.msrb.mxu2 %v3055_v56  ;;  %1568 = vmatpush.msrb.mxu3 %v3095_v20  ;;  %v783_v56 = vadd.f32 %v782_v35, %v682_v10 }
 0x15a   :  { %1672 = vmatpush.msra.mxu1 %v3067_v12  ;;  %1609 = vmatpush.msra.mxu0 %v1418_v5  ;;  %v875_v12 = vpop.f32.mrf.mxu3 }
 0x15b   :  { %1510 = vmatpush.msrb.mxu2 %v3065_v11  ;;  %1570 = vmatpush.msrb.mxu3 %v3103_v2 }
 0x15c   :  { %1674 = vmatpush.msra.mxu1 %v3080_v31  ;;  %1613 = vmatpush.msra.mxu0 %v1424_v58 }
 0x15d   :  { %1513 = vmatpush.msrb.mxu2 %v3078_v54  ;;  %1572 = vmatpush.msrb.mxu3 %v3117_v8  ;;  %v944_v54 = vpop.f32.mrf.mxu0  ;;  %v981_v5 = vpop.f32.mrf.mxu1 }
 0x15e   :  { %1676 = vmatpush.msra.mxu1 %v3095_v20  ;;  %1617 = vmatpush.msra.mxu0 %v1430_v17  ;;  %v3598_v17 = vand.u32 4294901760, %v3212_v6 }
 0x15f   :  { %v836_v63 = vpop.f32.mrf.mxu2  ;;  %1516 = vmatpush.msrb.mxu2 %v3091_v43  ;;  %1574 = vmatpush.msrb.mxu3 %v3127_v1 }
 0x160   :  { %v837_v11 = vadd.f32 %v836_v63, %v783_v56  ;;  %1678 = vmatpush.msra.mxu1 %v3103_v2  ;;  %1322 = vmatmul.f32.vlgmr.msra.gmra.mxu2 %v1054_v57  ;;  %v1810_v56 = vand.u32 4294901760, %v3422_v22  ;;  %v3437_v63 = vsub.f32 %v1712_v36, %v3424_v45 }
 0x161   :  { %1519 = vmatpush.msrb.mxu2 %v3106_v37  ;;  %1576 = vmatpush.msrb.mxu3 %v3142_v14 }
 0x162   :  { %v876_v48 = vadd.f32 %v875_v12, %v837_v11  ;;  %1680 = vmatpush.msra.mxu1 %v3117_v8  ;;  %1621 = vmatpush.msra.mxu0 %v1436_v19  ;;  %v3599_v19 = vand.u32 4294901760, %v3219_v7  ;;  %v3440_v11 = vand.u32 4294901760, %v1711_v40  ;;  %v1710_v12 = vld [vmem:[%s3591_s7 + $0x28] sm:$0xff] }
 0x163   :  { %1522 = vmatpush.msrb.mxu2 %v3115_v32  ;;  %1578 = vmatpush.msrb.mxu3 %v3152_v59 }
 0x164   :  { %v945_v31 = vadd.f32 %v944_v54, %v876_v48  ;;  %1682 = vmatpush.msra.mxu1 %v3127_v1  ;;  %1625 = vmatpush.msra.mxu0 %v1442_v21  ;;  %v1719_v21 = vld [vmem:[%s3591_s7 + $0x70] sm:$0xff]  ;;  %v1811_v54 = vsub.f32 %v3422_v22, %v1810_v56 }
 0x165   :  { %1525 = vmatpush.msrb.mxu2 %v3125_v26  ;;  %1580 = vmatpush.msrb.mxu3 %v3159_v25  ;;  %v1720_v26 = vld [vmem:[%s3591_s7 + $0x78] sm:$0xff] }
 0x166   :  { %v982_v43 = vadd.f32 %v981_v5, %v945_v31  ;;  %1684 = vmatpush.msra.mxu1 %v3142_v14  ;;  %1629 = vmatpush.msra.mxu0 %v1448_v60  ;;  %v3316_v1 = vand.u32 4294901760, %v1720_v26  ;;  %v3324_v14 = vand.u32 4294901760, %v1719_v21  ;;  %v1718_v60 = vld [vmem:[%s3591_s7 + $0x68] sm:$0xff]  ;;  %v1816_v31 = vand.u32 4294901760, %v3437_v63 }
 0x167   :  { %1528 = vmatpush.msrb.mxu2 %v3140_v4  ;;  %1582 = vmatpush.msrb.mxu3 %v3171_v61  ;;  %v3450_v5 = vand.u32 4294901760, %v1710_v12 }
 0x168   :  { %v985_v20 = vmax.f32 %v982_v43, 0.0  ;;  %1686 = vmatpush.msra.mxu1 %v3152_v59  ;;  %1633 = vmatpush.msra.mxu0 %v1454_v9  ;;  %v3322_v4 = vsub.f32 %v1720_v26, %v3316_v1  ;;  %v3333_v59 = vsub.f32 %v1719_v21, %v3324_v14  ;;  %v3335_v9 = vand.u32 4294901760, %v1718_v60 }
 0x169   :  { %1531 = vmatpush.msrb.mxu2 %v3150_v62  ;;  %1584 = vmatpush.msrb.mxu3 %v3179_v0  ;;  %v3455_v43 = vsub.f32 %v1711_v40, %v3440_v11 }
 0x16a   :  { %1688 = vmatpush.msra.mxu1 %v3159_v25  ;;  %v1395_v58 = vand.u32 4294901760, %v985_v20  ;;  %1637 = vmatpush.msra.mxu0 %v1460_v34  ;;  %v1768_v62 = vand.u32 4294901760, %v3322_v4  ;;  %v1717_v25 = vld [vmem:[%s3591_s7 + $0x60] sm:$0xff] }
 0x16b   :  { %1534 = vmatpush.msrb.mxu2 %v3162_v30  ;;  %1586 = vmatpush.msrb.mxu3 %v3192_v28  ;;  %v3350_v34 = vand.u32 4294901760, %v1717_v25 }
 0x16c   :  { %1690 = vmatpush.msra.mxu1 %v3171_v61  ;;  %v1396_v2 = vsub.f32 %v985_v20, %v1395_v58  ;;  %1641 = vmatpush.msra.mxu0 %v1466_v27  ;;  %v1769_v30 = vsub.f32 %v3322_v4, %v1768_v62  ;;  %v3348_v61 = vsub.f32 %v1718_v60, %v3335_v9  ;;  %v1716_v27 = vld [vmem:[%s3591_s7 + $0x58] sm:$0xff]  ;;  %v1709_v20 = vld [vmem:[%s3591_s7 + $0x20] sm:$0xff] }
 0x16d   :  { %1501 = vmatmul.f32.vlgmr.msrb.gmra.mxu1 %v1395_v58  ;;  %1537 = vmatpush.msrb.mxu2 %v3169_v24  ;;  %v1774_v24 = vand.u32 4294901760, %v3333_v59 }
 0x16e   :  { %1588 = vmatpush.msrb.mxu3 %v3202_v50  ;;  %1692 = vmatpush.msra.mxu1 %v3179_v0  ;;  %v1397_v37 = vand.u32 4294901760, %v1396_v2 }
 0x16f   :  { %1540 = vmatpush.msrb.mxu2 %v3177_v51  ;;  %1645 = vmatpush.msra.mxu0 %v1472_v33  ;;  %v1770_v51 = vand.u32 4294901760, %v1769_v30  ;;  %v1775_v0 = vsub.f32 %v3333_v59, %v1774_v24  ;;  %v1780_v33 = vand.u32 4294901760, %v3348_v61  ;;  %v1707_v30 = vld [vmem:[%s3591_s7 + $0x10] sm:$0xff] }
 0x170   :  { %1590 = vmatpush.msrb.mxu3 %v3209_v16  ;;  %1694 = vmatpush.msra.mxu1 %v3192_v28  ;;  %v1398_v32 = vsub.f32 %v1396_v2, %v1397_v37  ;;  %v3367_v28 = vand.u32 4294901760, %v1716_v27 }
 0x171   :  { %1594 = vmatmul.f32.vlgmr.msrb.gmra.mxu3 %v1397_v37  ;;  %1543 = vmatpush.msrb.mxu2 %v3190_v41  ;;  %v3363_v41 = vsub.f32 %v1717_v25, %v3350_v34  ;;  %v3465_v37 = vsub.f32 %v1710_v12, %v3450_v5 }
 0x172   :  { %1696 = vmatpush.msra.mxu1 %v3202_v50  ;;  %v1399_v8 = vand.u32 4294901760, %v1398_v32  ;;  %1649 = vmatpush.msra.mxu0 %v1478_v3  ;;  %v1715_v3 = vld [vmem:[%s3591_s7 + $0x50] sm:$0xff]  ;;  %v1781_v50 = vsub.f32 %v3348_v61, %v1780_v33  ;;  %v3467_v32 = vand.u32 4294901760, %v1709_v20 }
 0x173   :  { %1546 = vmatpush.msrb.mxu2 %v3200_v18  ;;  %1771 = vmatpush.msra.mxu3 %v1770_v51  ;;  %v1776_v18 = vand.u32 4294901760, %v1775_v0  ;;  %v1828_v26 = vand.u32 4294901760, %v3465_v37 }
 0x174   :  { %1698 = vmatpush.msra.mxu1 %v3209_v16  ;;  %1400 = vmatmul.f32.vlgmr.msrb.gmra.mxu0 %v1399_v8  ;;  %v3377_v16 = vand.u32 4294901760, %v1715_v3  ;;  %v1782_v55 = vand.u32 4294901760, %v1781_v50  ;;  %v1822_v8 = vand.u32 4294901760, %v3455_v43  ;;  %v3478_v21 = vsub.f32 %v1709_v20, %v3467_v32  ;;  %v1706_v50 = vld [vmem:[%s3591_s7 + $0x8] sm:$0xff] }
 0x175   :  { %1700 = vmatmul.f32.vlgmr.msra.gmra.mxu1 %v1395_v58  ;;  %1549 = vmatpush.msrb.mxu2 %v3212_v6  ;;  %v3381_v6 = vsub.f32 %v1716_v27, %v3367_v28  ;;  %v1829_v27 = vsub.f32 %v3465_v37, %v1828_v26 }
 0x176   :  { %1653 = vmatpush.msra.mxu0 %v1484_v52  ;;  %1922 = vmatpush.msrb.mxu1 %v3316_v1  ;;  %v1786_v52 = vand.u32 4294901760, %v3363_v41  ;;  %v3392_v47 = vsub.f32 %v1715_v3, %v3377_v16  ;;  %v1823_v25 = vsub.f32 %v3455_v43, %v1822_v8  ;;  %v1834_v51 = vand.u32 4294901760, %v3478_v21 }
 0x177   :  { %1552 = vmatpush.msrb.mxu2 %v3219_v7  ;;  %v1714_v7 = vld [vmem:[%s3591_s7 + $0x48] sm:$0xff]  ;;  %1777 = vmatpush.msra.mxu3 %v1776_v18  ;;  %v1792_v38 = vand.u32 4294901760, %v3381_v6  ;;  %v3498_v3 = vand.u32 4294901760, %v1707_v30 }
 0x178   :  { %1555 = vmatmul.f32.vlgmr.msrb.gmra.mxu2 %v1396_v2  ;;  %1657 = vmatpush.msra.mxu0 %v3598_v17  ;;  %v1787_v15 = vsub.f32 %v3363_v41, %v1786_v52  ;;  %v3394_v46 = vand.u32 4294901760, %v1714_v7  ;;  %v1798_v13 = vand.u32 4294901760, %v3392_v47  ;;  %v1817_v2 = vsub.f32 %v3437_v63, %v1816_v31  ;;  %v1708_v17 = vld [vmem:[%s3591_s7 + $0x18] sm:$0xff] }
 0x179   :  { %1726 = vmatpush.msra.mxu2 %v3316_v1  ;;  %1924 = vmatpush.msrb.mxu1 %v3324_v14  ;;  %v1793_v44 = vsub.f32 %v3381_v6, %v1792_v38  ;;  %v3480_v60 = vand.u32 4294901760, %v1708_v17  ;;  %v1824_v18 = vand.u32 4294901760, %v1823_v25  ;;  %v3511_v53 = vsub.f32 %v1707_v30, %v3498_v3 }
 0x17a   :  { %1661 = vmatpush.msra.mxu0 %v3599_v19  ;;  %1783 = vmatpush.msra.mxu3 %v1782_v55  ;;  %v1788_v29 = vand.u32 4294901760, %v1787_v15  ;;  %v3404_v23 = vsub.f32 %v1714_v7, %v3394_v46  ;;  %v1799_v57 = vsub.f32 %v3392_v47, %v1798_v13  ;;  %v1818_v19 = vand.u32 4294901760, %v1817_v2 }
 0x17b   :  { %1728 = vmatpush.msra.mxu2 %v3324_v14  ;;  %1926 = vmatpush.msrb.mxu1 %v3335_v9  ;;  %v1794_v49 = vand.u32 4294901760, %v1793_v44  ;;  %v3496_v0 = vsub.f32 %v1708_v17, %v3480_v60  ;;  %v1830_v7 = vand.u32 4294901760, %v1829_v27  ;;  %v1835_v55 = vsub.f32 %v3478_v21, %v1834_v51  ;;  %v1705_v44 = vld [vmem:[%s3591_s7] sm:$0xff] }
 0x17c   :  { %1663 = vmatmul.f32.vlgmr.msra.gmra.mxu0 %v1395_v58  ;;  %1789 = vmatpush.msra.mxu3 %v1788_v29  ;;  %v1804_v42 = vand.u32 4294901760, %v3404_v23  ;;  %v1800_v10 = vand.u32 4294901760, %v1799_v57  ;;  %v1812_v58 = vand.u32 4294901760, %v1811_v54  ;;  %v3515_v29 = vand.u32 4294901760, %v1706_v50 }
 0x17d   :  { %1869 = vmatpush.msrb.mxu0 %v3322_v4  ;;  %1730 = vmatpush.msra.mxu2 %v3335_v9  ;;  %v1840_v15 = vand.u32 4294901760, %v3496_v0  ;;  %v1836_v36 = vand.u32 4294901760, %v1835_v55  ;;  %v3523_v40 = vand.u32 4294901760, %v1705_v44 }
 0x17e   :  { %1928 = vmatpush.msrb.mxu1 %v3350_v34  ;;  %v1805_v35 = vsub.f32 %v3404_v23, %v1804_v42  ;;  %1795 = vmatpush.msra.mxu3 %v1794_v49  ;;  %v1846_v49 = vand.u32 4294901760, %v3511_v53 }
 0x17f   :  { %1872 = vmatpush.msrb.mxu0 %v3333_v59  ;;  %1732 = vmatpush.msra.mxu2 %v3350_v34  ;;  %v1841_v57 = vsub.f32 %v3496_v0, %v1840_v15 }
 0x180   :  { %1930 = vmatpush.msrb.mxu1 %v3367_v28  ;;  %v1806_v48 = vand.u32 4294901760, %v1805_v35  ;;  %1801 = vmatpush.msra.mxu3 %v1800_v10  ;;  %v1851_v10 = vsub.f32 %v1706_v50, %v3515_v29  ;;  %v1847_v12 = vsub.f32 %v3511_v53, %v1846_v49 }
 0x181   :  { %1875 = vmatpush.msrb.mxu0 %v3348_v61  ;;  %1734 = vmatpush.msra.mxu2 %v3367_v28  ;;  %v1842_v35 = vand.u32 4294901760, %v1841_v57 }
 0x182   :  { %1932 = vmatpush.msrb.mxu1 %v3377_v16  ;;  %1807 = vmatpush.msra.mxu3 %v1806_v48  ;;  %v1857_v48 = vsub.f32 %v1705_v44, %v3523_v40  ;;  %v1852_v54 = vand.u32 4294901760, %v1851_v10  ;;  %v1848_v20 = vand.u32 4294901760, %v1847_v12 }
 0x183   :  { %1878 = vmatpush.msrb.mxu0 %v3363_v41  ;;  %1736 = vmatpush.msra.mxu2 %v3377_v16 }
 0x184   :  { %1934 = vmatpush.msrb.mxu1 %v3394_v46  ;;  %1813 = vmatpush.msra.mxu3 %v1812_v58  ;;  %v1858_v58 = vand.u32 4294901760, %v1857_v48  ;;  %v1853_v2 = vsub.f32 %v1851_v10, %v1852_v54 }
 0x185   :  { %1881 = vmatpush.msrb.mxu0 %v3381_v6  ;;  %1738 = vmatpush.msra.mxu2 %v3394_v46 }
 0x186   :  { %1936 = vmatpush.msrb.mxu1 %v3406_v39  ;;  %1819 = vmatpush.msra.mxu3 %v1818_v19  ;;  %v1859_v17 = vsub.f32 %v1857_v48, %v1858_v58  ;;  %v1854_v19 = vand.u32 4294901760, %v1853_v2 }
 0x187   :  { %1884 = vmatpush.msrb.mxu0 %v3392_v47  ;;  %1740 = vmatpush.msra.mxu2 %v3406_v39 }
 0x188   :  { %1938 = vmatpush.msrb.mxu1 %v3424_v45  ;;  %1825 = vmatpush.msra.mxu3 %v1824_v18  ;;  %v1860_v25 = vand.u32 4294901760, %v1859_v17 }
 0x189   :  { %1887 = vmatpush.msrb.mxu0 %v3404_v23  ;;  %1742 = vmatpush.msra.mxu2 %v3424_v45 }
 0x18a   :  { %1940 = vmatpush.msrb.mxu1 %v3440_v11  ;;  %1831 = vmatpush.msra.mxu3 %v1830_v7 }
 0x18b   :  { %1890 = vmatpush.msrb.mxu0 %v3422_v22  ;;  %1744 = vmatpush.msra.mxu2 %v3440_v11 }
 0x18c   :  { %1942 = vmatpush.msrb.mxu1 %v3450_v5  ;;  %1837 = vmatpush.msra.mxu3 %v1836_v36 }
 0x18d   :  { %1893 = vmatpush.msrb.mxu0 %v3437_v63  ;;  %1746 = vmatpush.msra.mxu2 %v3450_v5 }
 0x18e   :  { %1944 = vmatpush.msrb.mxu1 %v3467_v32  ;;  %1843 = vmatpush.msra.mxu3 %v1842_v35 }
 0x18f   :  { %1896 = vmatpush.msrb.mxu0 %v3455_v43  ;;  %1748 = vmatpush.msra.mxu2 %v3467_v32 }
 0x190   :  { %1946 = vmatpush.msrb.mxu1 %v3480_v60  ;;  %1849 = vmatpush.msra.mxu3 %v1848_v20 }
 0x191   :  { %1899 = vmatpush.msrb.mxu0 %v3465_v37  ;;  %1750 = vmatpush.msra.mxu2 %v3480_v60 }
 0x192   :  { %1948 = vmatpush.msrb.mxu1 %v3498_v3  ;;  %1855 = vmatpush.msra.mxu3 %v1854_v19 }
 0x193   :  { %1902 = vmatpush.msrb.mxu0 %v3478_v21  ;;  %1752 = vmatpush.msra.mxu2 %v3498_v3 }
 0x194   :  { %1950 = vmatpush.msrb.mxu1 %v3515_v29  ;;  %1861 = vmatpush.msra.mxu3 %v1860_v25 }
 0x195   :  { %1905 = vmatpush.msrb.mxu0 %v3496_v0  ;;  %1754 = vmatpush.msra.mxu2 %v3515_v29 }
 0x196   :  { %1952 = vmatpush.msrb.mxu1 %v3523_v40  ;;  %2030 = vmatpush.msrb.mxu3 %v3316_v1  ;;  %v2094_v1 = vld [vmem:[%s3590_s6] ss:$0 sm:$0xff] }
 0x197   :  { %1908 = vmatpush.msrb.mxu0 %v3511_v53  ;;  %1756 = vmatpush.msra.mxu2 %v3523_v40 }
 0x198   :  { %2032 = vmatpush.msrb.mxu3 %v3324_v14 }
 0x199   :  { %1963 = vmatpush.msrb.mxu2 %v1768_v62  ;;  %1911 = vmatpush.msrb.mxu0 %v1851_v10 }
 0x19a   :  { %2034 = vmatpush.msrb.mxu3 %v3335_v9 }
 0x19b   :  { %1967 = vmatpush.msrb.mxu2 %v1774_v24  ;;  %1914 = vmatpush.msrb.mxu0 %v1857_v48 }
 0x19c   :  { %2036 = vmatpush.msrb.mxu3 %v3350_v34 }
 0x19d   :  { %1971 = vmatpush.msrb.mxu2 %v1780_v33 }
 0x19e   :  { %2038 = vmatpush.msrb.mxu3 %v3367_v28 }
 0x19f   :  { %1975 = vmatpush.msrb.mxu2 %v1786_v52 }
 0x1a0   :  { %2040 = vmatpush.msrb.mxu3 %v3377_v16 }
 0x1a1   :  { %1979 = vmatpush.msrb.mxu2 %v1792_v38 }
 0x1a2   :  { %2042 = vmatpush.msrb.mxu3 %v3394_v46 }
 0x1a3   :  { %1983 = vmatpush.msrb.mxu2 %v1798_v13 }
 0x1a4   :  { %2044 = vmatpush.msrb.mxu3 %v3406_v39 }
 0x1a5   :  { %1987 = vmatpush.msrb.mxu2 %v1804_v42 }
 0x1a6   :  { %2046 = vmatpush.msrb.mxu3 %v3424_v45 }
 0x1a7   :  { %1991 = vmatpush.msrb.mxu2 %v1810_v56 }
 0x1a8   :  { %2048 = vmatpush.msrb.mxu3 %v3440_v11 }
 0x1a9   :  { %1995 = vmatpush.msrb.mxu2 %v1816_v31 }
 0x1aa   :  { %2050 = vmatpush.msrb.mxu3 %v3450_v5 }
 0x1ab   :  { %1999 = vmatpush.msrb.mxu2 %v1822_v8 }
 0x1ac   :  { %2052 = vmatpush.msrb.mxu3 %v3467_v32  ;;  %v2095_v32 = vld [vmem:[%s3592_s8] ss:$0 sm:$0xff] }
 0x1ad   :  { %2003 = vmatpush.msrb.mxu2 %v1828_v26 }
 0x1ae   :  { %2054 = vmatpush.msrb.mxu3 %v3480_v60 }
 0x1af   :  { %2007 = vmatpush.msrb.mxu2 %v1834_v51 }
 0x1b0   :  { %2056 = vmatpush.msrb.mxu3 %v3498_v3 }
 0x1b1   :  { %2011 = vmatpush.msrb.mxu2 %v1840_v15 }
 0x1b2   :  { %2058 = vmatpush.msrb.mxu3 %v3515_v29 }
 0x1b3   :  { %2015 = vmatpush.msrb.mxu2 %v1846_v49 }
 0x1b4   :  { %2060 = vmatpush.msrb.mxu3 %v3523_v40 }
 0x1b5   :  { %2019 = vmatpush.msrb.mxu2 %v1852_v54 }
 0x1b7   :  { %2023 = vmatpush.msrb.mxu2 %v1858_v58 }
 0x1cf   :  { %v1215_v9 = vpop.f32.mrf.mxu0 }
 0x1d1   :  { %v1254_v61 = vpop.f32.mrf.mxu1 }
 0x1d3   :  { %v1161_v62 = vpop.f32.mrf.mxu3 }
 0x1db   :  { %v1060_v4 = vpop.f32.mrf.mxu2  ;;  %v1360_v28 = vpop.f32.mrf.mxu3 }
 0x1dc   :  { %v1061_v14 = vadd.f32 %v2094_v1, %v1060_v4 }
 0x1de   :  { %v1162_v59 = vadd.f32 %v1161_v62, %v1061_v14 }
 0x1e0   :  { %v1216_v24 = vadd.f32 %v1215_v9, %v1162_v59 }
 0x1e2   :  { %v1255_v34 = vadd.f32 %v1254_v61, %v1216_v24 }
 0x1e3   :  { %v1323_v33 = vpop.f32.mrf.mxu2 }
 0x1e4   :  { %v1324_v41 = vadd.f32 %v1323_v33, %v1255_v34 }
 0x1e6   :  { %v1361_v16 = vadd.f32 %v1360_v28, %v1324_v41 }
 0x1ea   :  { %v1502_v47 = vpop.f32.mrf.mxu1 }
 0x1f1   :  { %v1401_v52 = vpop.f32.mrf.mxu0 }
 0x1f2   :  { %v1402_v6 = vadd.f32 %v1401_v52, %v1361_v16  ;;  %v1701_v45 = vpop.f32.mrf.mxu1 }
 0x1f4   :  { %v1503_v46 = vadd.f32 %v1502_v47, %v1402_v6  ;;  %v1595_v23 = vpop.f32.mrf.mxu3 }
 0x1f9   :  { %v1664_v42 = vpop.f32.mrf.mxu0 }
 0x1fb   :  { %v1556_v38 = vpop.f32.mrf.mxu2 }
 0x1fc   :  { %v1557_v13 = vadd.f32 %v1556_v38, %v1503_v46 }
 0x1fe   :  { %v1596_v39 = vadd.f32 %v1595_v23, %v1557_v13 }
 0x200   :  { %v1665_v22 = vadd.f32 %v1664_v42, %v1596_v39 }
 0x202   :  { %v1702_v56 = vadd.f32 %v1701_v45, %v1665_v22 }
 0x204   :  { %v1704_v63 = vmax.f32 %v1702_v56, 0.0 }
 0x206   :  { %v1757_v11 = vand.u32 4294901760, %v1704_v63 }
 0x208   :  { %1863 = vmatmul.f32.vlgmr.msra.gmra.mxu3 %v1757_v11  ;;  %v1758_v31 = vsub.f32 %v1704_v63, %v1757_v11 }
 0x20a   :  { %1917 = vmatmul.f32.vlgmr.msrb.gmra.mxu0 %v1758_v31  ;;  %v1759_v5 = vand.u32 4294901760, %v1758_v31 }
 0x20c   :  { %1956 = vmatmul.f32.vlgmr.msrb.gmra.mxu1 %v1759_v5  ;;  %v1760_v43 = vsub.f32 %v1758_v31, %v1759_v5 }
 0x20e   :  { %v1761_v37 = vand.u32 4294901760, %v1760_v43 }
 0x210   :  { %1762 = vmatmul.f32.vlgmr.msra.gmra.mxu2 %v1761_v37  ;;  %2062 = vmatmul.f32.vlgmr.msrb.gmra.mxu3 %v1757_v11 }
 0x218   :  { %2025 = vmatmul.f32.vlgmr.msrb.gmra.mxu2 %v1757_v11 }
 0x287   :  { %v1918_v30 = vpop.f32.mrf.mxu0 }
 0x289   :  { %v1957_v51 = vpop.f32.mrf.mxu1 }
 0x28b   :  { %v1864_v8 = vpop.f32.mrf.mxu3 }
 0x293   :  { %v1763_v26 = vpop.f32.mrf.mxu2  ;;  %v2063_v50 = vpop.f32.mrf.mxu3 }
 0x294   :  { %v1764_v21 = vadd.f32 %v2095_v32, %v1763_v26 }
 0x296   :  { %v1865_v60 = vadd.f32 %v1864_v8, %v1764_v21 }
 0x298   :  { %v1919_v27 = vadd.f32 %v1918_v30, %v1865_v60 }
 0x29a   :  { %v1958_v0 = vadd.f32 %v1957_v51, %v1919_v27 }
 0x29b   :  { %v2026_v3 = vpop.f32.mrf.mxu2 }
 0x29c   :  { %v2027_v18 = vadd.f32 %v2026_v3, %v1958_v0 }
 0x29e   :  { %v2064_v7 = vadd.f32 %v2063_v50, %v2027_v18 }
 0x2a0   :  { %2067 = vst.msk [vmem:[#allocation7] sm:$0xff] %vm2066_vm1, %v2064_v7 }
 0x2a1   :  { %2078 = dma.vmem_to_hbm [thread:$0]  %s2074_s18, 128, %s2076_s21, [#allocation4]  }
 0x2a2   :  { %2172 = dma.done.wait [#allocation4], 128  }
 0x2a3   :  { %2173 = vsyncadd [#allocation4], 4294967168 }
 0x2a4   :  { %2083 = vsyncpa [#allocation3], 1 }
 0x2a5   :  { %2084 = vsyncpa [#allocation6], 1 }
 0x2a6   :  { %2085 = vsyncpa [#allocation4], 1 }

</bundles_post_ra>
